<compile_context>
chip_gen: v5e
topology: v5e:2x2
jax: 0.10.0
libtpu: 0.0.40
codegen_flags: <defaults>
</compile_context>

<pallas_src>
import functools

import jax
import jax.numpy as jnp
import numpy as np
from jax.experimental import pallas as pl
from jax.experimental.pallas import tpu as pltpu


# Set to jnp.bfloat16 on v6e / v7x to halve MXU-operand width (accumulation stays f32).
_MATMUL_DTYPE = jnp.float32


def _round_up(x, m):
    return ((x + m - 1) // m) * m


def _pick_tile(total, preferred, quantum):
    """Largest tile <= preferred that divides `total` (total is a multiple of quantum)."""
    if total <= preferred:
        return total
    t = (preferred // quantum) * quantum
    while total % t:
        t -= quantum
    return t


# ----------------------------------------------------------------------------
# Pallas kernels
# ----------------------------------------------------------------------------
def _fused_lstm_kernel(num_layers, x_ref, w_ih0_ref, w_ihr_ref, w_hh_ref, b_ref,
                       out_ref, g_scr, h_scr, c_scr):
    """All LSTM layers + all timesteps in a single kernel invocation.

    x_ref:     (T*Bp, Ep)      time-major, batch padded to 8, E padded to 128
    w_ih0_ref: (Ep, 4*Hp)      layer-0 input weights (gate-block padded)
    w_ihr_ref: (max(L-1,1), Hp, 4*Hp)  input weights for layers 1..L-1
    w_hh_ref:  (L, Hp, 4*Hp)   recurrent weights
    b_ref:     (L, 1, 4*Hp)    b_ih + b_hh per layer
    out_ref:   (T*Bp, Hp)      last layer hidden states (also used as the VMEM-resident
                               inter-layer activation buffer)
    g_scr:     (T*Bp, 4*Hp)    precomputed input-projection gates for the current layer
    h_scr/c_scr: (Bp, Hp)      recurrent state
    """
    Bp, Hp = h_scr.shape
    TB = x_ref.shape[0]
    T = TB // Bp

    def run_layer(inp2d, w_ih, w_hh, bias):
        # ---- hoisted input projection: one big MXU matmul for every timestep at once.
        g_scr[...] = (
            jnp.dot(inp2d.astype(_MATMUL_DTYPE), w_ih.astype(_MATMUL_DTYPE),
                    preferred_element_type=jnp.float32)
            + bias
        )
        w_hh_c = w_hh.astype(_MATMUL_DTYPE)
        h_scr[...] = jnp.zeros_like(h_scr)
        c_scr[...] = jnp.zeros_like(c_scr)

        # ---- recurrence: only h @ W_hh per step, state stays in VMEM scratch.
        def step(t, carry):
            row0 = pl.multiple_of(t * Bp, Bp)
            gates = g_scr[pl.ds(row0, Bp), :] + jnp.dot(
                h_scr[...].astype(_MATMUL_DTYPE), w_hh_c,
                preferred_element_type=jnp.float32)
            # Hp is a multiple of 128, so each gate slice is a full, lane-aligned block.
            i_g = jax.nn.sigmoid(gates[:, 0 * Hp:1 * Hp])
            f_g = jax.nn.sigmoid(gates[:, 1 * Hp:2 * Hp])
            g_g = jnp.tanh(gates[:, 2 * Hp:3 * Hp])
            o_g = jax.nn.sigmoid(gates[:, 3 * Hp:4 * Hp])
            c_new = f_g * c_scr[...] + i_g * g_g
            h_new = o_g * jnp.tanh(c_new)
            c_scr[...] = c_new
            h_scr[...] = h_new
            out_ref[pl.ds(row0, Bp), :] = h_new.astype(out_ref.dtype)
            return carry

        jax.lax.fori_loop(0, T, step, 0)

    # Layer 0 consumes the (padded) feature/embedding slab.
    run_layer(x_ref[...], w_ih0_ref[...], w_hh_ref[0], b_ref[0])
    # Deeper layers consume the previous layer's hiddens directly from VMEM (out_ref).
    for l in range(1, num_layers):
        run_layer(out_ref[...], w_ihr_ref[l - 1], w_hh_ref[l], b_ref[l])


def _linear_kernel(x_ref, w_ref, b_ref, o_ref):
    o_ref[...] = (
        jnp.dot(x_ref[...].astype(_MATMUL_DTYPE), w_ref[...].astype(_MATMUL_DTYPE),
                preferred_element_type=jnp.float32)
        + b_ref[...]
    ).astype(o_ref.dtype)


# ----------------------------------------------------------------------------
# Wrappers
# ----------------------------------------------------------------------------
def fused_lstm_pallas(x2d, w_ih0_t, w_ih_rest_t, w_hh_t, bias, *, num_layers, bp):
    """x2d: (T*Bp, Ep) -> last-layer hiddens (T*Bp, Hp). Single kernel launch."""
    TB, _ = x2d.shape
    Hp = w_hh_t.shape[1]
    kernel = functools.partial(_fused_lstm_kernel, num_layers)
    vmem = pl.BlockSpec(memory_space=pltpu.MemorySpace.VMEM)
    return pl.pallas_call(
        kernel,
        out_shape=jax.ShapeDtypeStruct((TB, Hp), jnp.float32),
        in_specs=[vmem, vmem, vmem, vmem, vmem],   # whole arrays, DMA'd once (no grid)
        out_specs=vmem,
        scratch_shapes=[
            pltpu.VMEM((TB, 4 * Hp), jnp.float32),  # precomputed input gates
            pltpu.VMEM((bp, Hp), jnp.float32),      # h state
            pltpu.VMEM((bp, Hp), jnp.float32),      # c state
        ],
        # NOTE: for large T*B*4H slabs raise the scoped VMEM limit via
        # pltpu.CompilerParams(vmem_limit_bytes=...); unnecessary at these sizes.
    )(x2d, w_ih0_t, w_ih_rest_t, w_hh_t, bias)


def linear_pallas(x, w_t, bias, *, tn=None, tv=None):
    """Tiled projection. x: (N_pad, Hp), w_t: (Hp, Vp), bias: (1, Vp) -> (N_pad, Vp)."""
    N, Hp = x.shape
    Vp = w_t.shape[1]
    if tn is None:
        tn = _pick_tile(N, 256, 8)        # rows: sublane-aligned
    if tv is None:
        tv = _pick_tile(Vp, 512, 128)     # vocab: lane-aligned, multiple of 128 (v5e MXU)
    assert N % tn == 0 and Vp % tv == 0
    return pl.pallas_call(
        _linear_kernel,
        out_shape=jax.ShapeDtypeStruct((N, Vp), jnp.float32),
        grid_spec=pltpu.PrefetchScalarGridSpec(
            num_scalar_prefetch=0,
            grid=(N // tn, Vp // tv),
            in_specs=[
                pl.BlockSpec((tn, Hp), lambda i, j: (i, 0)),
                pl.BlockSpec((Hp, tv), lambda i, j: (0, j)),
                pl.BlockSpec((1, tv), lambda i, j: (0, j)),
            ],
            out_specs=pl.BlockSpec((tn, tv), lambda i, j: (i, j)),
        ),
        compiler_params=pltpu.CompilerParams(
            dimension_semantics=("parallel", "parallel"),  # lets v7x use both TCs
        ),
    )(x, w_t, bias)


def _pack_indices(lengths, T):
    """pack_padded_sequence order: for t in range(T): for b in range(B) if lengths[b] > t."""
    t_idx, b_idx = [], []
    for t in range(T):
        for b, ln in enumerate(lengths):
            if ln > t:
                t_idx.append(t)
                b_idx.append(b)
    return t_idx, b_idx


def decoder_rnn_forward(kparams, features, captions, lengths):
    """Mirror of DecoderRNN.forward.

    features: (B, E) float32
    captions: (B, S) int32
    lengths:  python list of ints (sorted descending, PyTorch pack_padded requirement)
    Returns:  (sum(lengths), vocab) float32
    """
    B, S = captions.shape
    T = S + 1
    E = features.shape[1]
    Ep = kparams["embed"].shape[1]
    Hp = kparams["w_hh_t"].shape[1]
    V = kparams["vocab_size"]
    num_layers = kparams["w_hh_t"].shape[0]
    Bp = _round_up(B, 8)

    # ---- glue: embedding gather, feature concat, pad to (8,128)-friendly shapes.
    emb = jnp.take(kparams["embed"], captions, axis=0)           # (B, S, Ep)
    feat = jnp.pad(features, ((0, 0), (0, Ep - E)))              # (B, Ep)
    x = jnp.concatenate([feat[:, None, :], emb], axis=1)         # (B, T, Ep)
    x = jnp.pad(x, ((0, Bp - B), (0, 0), (0, 0)))                # (Bp, T, Ep)
    x2d = jnp.transpose(x, (1, 0, 2)).reshape(T * Bp, Ep)        # time-major, flat rows

    # ---- fused multi-layer LSTM (single Pallas launch, all state in VMEM).
    h_all = fused_lstm_pallas(
        x2d, kparams["w_ih0_t"], kparams["w_ih_rest_t"], kparams["w_hh_t"],
        kparams["bias"], num_layers=num_layers, bp=Bp)           # (T*Bp, Hp)

    # ---- pack_padded gather into a lane-dense slab for the projection (glue).
    t_idx, b_idx = _pack_indices(lengths, T)
    N = len(t_idx)
    flat_idx = jnp.asarray([t * Bp + b for t, b in zip(t_idx, b_idx)], jnp.int32)
    packed = h_all[flat_idx]                                     # (N, Hp)
    N_pad = _round_up(N, 8)
    packed = jnp.pad(packed, ((0, N_pad - N), (0, 0)))           # sublane-aligned rows

    # ---- tiled vocab projection (Pallas kernel), then strip the padding.
    logits = linear_pallas(packed, kparams["lin_w_t"], kparams["lin_b"])
    return logits[:N, :V]


# ----------------------------------------------------------------------------
# Parameter init (logical PyTorch shapes) + kernel-layout preparation (pad/transpose)
# ----------------------------------------------------------------------------
def init_params(key, embed_size, hidden_size, vocab_size, num_layers):
    keys = jax.random.split(key, 3 + 4 * num_layers)
    params = {"embed": 0.1 * jax.random.normal(keys[0], (vocab_size, embed_size), jnp.float32)}
    lstm = []
    for layer in range(num_layers):
        in_size = embed_size if layer == 0 else hidden_size
        kw = keys[3 + 4 * layer: 3 + 4 * (layer + 1)]
        w_ih = 0.1 * jax.random.normal(kw[0], (4 * hidden_size, in_size), jnp.float32)
        w_hh = 0.1 * jax.random.normal(kw[1], (4 * hidden_size, hidden_size), jnp.float32)
        b_ih = 0.1 * jax.random.normal(kw[2], (4 * hidden_size,), jnp.float32)
        b_hh = 0.1 * jax.random.normal(kw[3], (4 * hidden_size,), jnp.float32)
        lstm.append({"w_ih": w_ih, "w_hh": w_hh, "b": b_ih + b_hh})
    params["lstm"] = lstm
    params["lin_w"] = 0.1 * jax.random.normal(keys[1], (vocab_size, hidden_size), jnp.float32)
    params["lin_b"] = 0.1 * jax.random.normal(keys[2], (vocab_size,), jnp.float32)
    return params


def prepare_kernel_params(params):
    """Pad (per gate block) to lane/sublane friendly sizes and pre-transpose for the MXU."""
    vocab_size, embed_size = params["embed"].shape
    hidden_size = params["lstm"][0]["w_hh"].shape[1]
    num_layers = len(params["lstm"])
    Ep = _round_up(embed_size, 128)
    Hp = _round_up(hidden_size, 128)
    Vp = _round_up(vocab_size, 128)

    def pad_gate_weight(w, in_size, in_pad):
        # (4H, in) -> (in_pad, 4*Hp), zero-padded per gate block so gate k lives in
        # columns [k*Hp, (k+1)*Hp).  Zero padding keeps the real outputs exact.
        w4 = w.reshape(4, hidden_size, in_size)
        w4 = jnp.pad(w4, ((0, 0), (0, Hp - hidden_size), (0, in_pad - in_size)))
        return w4.reshape(4 * Hp, in_pad).T

    def pad_bias(b):
        b4 = jnp.pad(b.reshape(4, hidden_size), ((0, 0), (0, Hp - hidden_size)))
        return b4.reshape(1, 4 * Hp)

    kp = {
        "embed": jnp.pad(params["embed"], ((0, 0), (0, Ep - embed_size))),
        "w_ih0_t": pad_gate_weight(params["lstm"][0]["w_ih"], embed_size, Ep),
        "w_hh_t": jnp.stack([pad_gate_weight(l["w_hh"], hidden_size, Hp)
                             for l in params["lstm"]]),
        "bias": jnp.stack([pad_bias(l["b"]) for l in params["lstm"]]),
        "lin_w_t": jnp.pad(params["lin_w"].T,
                           ((0, Hp - hidden_size), (0, Vp - vocab_size))),
        "lin_b": jnp.pad(params["lin_b"], (0, Vp - vocab_size))[None, :],
        "vocab_size": vocab_size,
    }
    if num_layers > 1:
        kp["w_ih_rest_t"] = jnp.stack([pad_gate_weight(l["w_ih"], hidden_size, Hp)
                                       for l in params["lstm"][1:]])
    else:
        kp["w_ih_rest_t"] = jnp.zeros((1, Hp, 4 * Hp), jnp.float32)  # unused dummy
    return kp


# ----------------------------------------------------------------------------
# Pure-JAX reference (correctness check)
# ----------------------------------------------------------------------------
def _ref_lstm_layer(x_tbe, w_ih, w_hh, b):
    H = w_hh.shape[1]
    B = x_tbe.shape[1]
    w_ih_t, w_hh_t = w_ih.T, w_hh.T

    def step(carry, xt):
        h, c = carry
        gates = xt @ w_ih_t + h @ w_hh_t + b
        i_g, f_g, g_g, o_g = jnp.split(gates, 4, axis=-1)
        i_g = jax.nn.sigmoid(i_g)
        f_g = jax.nn.sigmoid(f_g)
        g_g = jnp.tanh(g_g)
        o_g = jax.nn.sigmoid(o_g)
        c = f_g * c + i_g * g_g
        h = o_g * jnp.tanh(c)
        return (h, c), h

    init = (jnp.zeros((B, H), jnp.float32), jnp.zeros((B, H), jnp.float32))
    _, hs = jax.lax.scan(step, init, x_tbe)
    return hs


def _ref_forward(params, features, captions, lengths):
    B, S = captions.shape
    T = S + 1
    emb = jnp.take(params["embed"], captions, axis=0)
    x = jnp.concatenate([features[:, None, :], emb], axis=1)
    x = jnp.transpose(x, (1, 0, 2))
    for layer in params["lstm"]:
        x = _ref_lstm_layer(x, layer["w_ih"], layer["w_hh"], layer["b"])
    t_idx, b_idx = _pack_indices(lengths, T)
    packed = x[jnp.asarray(t_idx), jnp.asarray(b_idx)]
    return packed @ params["lin_w"].T + params["lin_b"]


# ----------------------------------------------------------------------------
if __name__ == "__main__":
    EMBED = 32
    HIDDEN = 32
    VOCAB = 40
    NUM_LAYERS = 2
    BATCH = 2
    SEQ = 8          # caption length; LSTM sequence length is SEQ + 1 (feature prepended)

    key = jax.random.PRNGKey(0)
    k_feat, k_cap, k_param = jax.random.split(key, 3)

    params = init_params(k_param, EMBED, HIDDEN, VOCAB, NUM_LAYERS)
    kparams = prepare_kernel_params(params)

    features = jax.random.normal(k_feat, (BATCH, EMBED), jnp.float32)
    captions = jax.random.randint(k_cap, (BATCH, SEQ), 0, VOCAB, dtype=jnp.int32)
    lengths = [SEQ + 1, SEQ - 2]   # sorted descending, as pack_padded_sequence requires

    out = jax.block_until_ready(decoder_rnn_forward(kparams, features, captions, lengths))
    ref = jax.block_until_ready(_ref_forward(params, features, captions, lengths))

    np.testing.assert_allclose(np.asarray(out), np.asarray(ref), rtol=1e-4, atol=1e-4)
    assert out.shape == (sum(lengths), VOCAB)

    print("KERNEL_OK")
</pallas_src>

<mosaic_0001>
module attributes {stable_mosaic.version = 11 : i64} {
  func.func @_fused_lstm_kernel(%arg0: memref<72x128xf32, #tpu.memory_space<vmem>>, %arg1: memref<128x512xf32, #tpu.memory_space<vmem>>, %arg2: memref<1x128x512xf32, #tpu.memory_space<vmem>>, %arg3: memref<2x128x512xf32, #tpu.memory_space<vmem>>, %arg4: memref<2x1x512xf32, #tpu.memory_space<vmem>>, %arg5: memref<72x128xf32, #tpu.memory_space<vmem>>, %arg6: memref<72x512xf32, #tpu.memory_space<vmem>>, %arg7: memref<8x128xf32, #tpu.memory_space<vmem>>, %arg8: memref<8x128xf32, #tpu.memory_space<vmem>>) attributes {dimension_semantics = [], scalar_prefetch = 0 : i64, scratch_operands = 3 : i64, tpu.core_type = #tpu.core_type<tc>} {
    %c0 = arith.constant 0 : index
    %c0_0 = arith.constant 0 : index
    %0 = vector.load %arg0[%c0, %c0_0] : memref<72x128xf32, #tpu.memory_space<vmem>>, vector<72x128xf32>
    %c0_1 = arith.constant 0 : index
    %c0_2 = arith.constant 0 : index
    %1 = vector.load %arg1[%c0_1, %c0_2] : memref<128x512xf32, #tpu.memory_space<vmem>>, vector<128x512xf32>
    %c0_3 = arith.constant 0 : index
    %c0_4 = arith.constant 0 : index
    %c0_5 = arith.constant 0 : index
    %2 = vector.load %arg3[%c0_3, %c0_4, %c0_5] : memref<2x128x512xf32, #tpu.memory_space<vmem>>, vector<1x128x512xf32>
    %3 = vector.shape_cast %2 : vector<1x128x512xf32> to vector<128x512xf32>
    %c0_6 = arith.constant 0 : index
    %c0_7 = arith.constant 0 : index
    %c0_8 = arith.constant 0 : index
    %4 = vector.load %arg4[%c0_6, %c0_7, %c0_8] : memref<2x1x512xf32, #tpu.memory_space<vmem>>, vector<1x1x512xf32>
    %5 = vector.shape_cast %4 : vector<1x1x512xf32> to vector<1x512xf32>
    %cst = arith.constant dense<0.000000e+00> : vector<72x512xf32>
    %6 = tpu.matmul %0, %1, %cst {dimension_numbers = #tpu.dot_dimension_numbers<[1], [0], [0], [1], [0, 0, 1, 1], [], []>} : vector<72x128xf32>, vector<128x512xf32>, vector<72x512xf32> -> vector<72x512xf32>
    %7 = vector.broadcast %5 : vector<1x512xf32> to vector<72x512xf32>
    %8 = arith.addf %6, %7 : vector<72x512xf32>
    %c0_9 = arith.constant 0 : index
    %c0_10 = arith.constant 0 : index
    %9 = vector.load %arg6[%c0_9, %c0_10] : memref<72x512xf32, #tpu.memory_space<vmem>>, vector<72x512xf32>
    tpu.vector_store %arg6[%c0_9, %c0_10], %8 {strides = array<i32>} : memref<72x512xf32, #tpu.memory_space<vmem>>, vector<72x512xf32>,
    %cst_11 = arith.constant 0.000000e+00 : f32
    %10 = vector.broadcast %cst_11 : f32 to vector<8x128xf32>
    %c0_12 = arith.constant 0 : index
    %c0_13 = arith.constant 0 : index
    %11 = vector.load %arg7[%c0_12, %c0_13] : memref<8x128xf32, #tpu.memory_space<vmem>>, vector<8x128xf32>
    tpu.vector_store %arg7[%c0_12, %c0_13], %10 {strides = array<i32>} : memref<8x128xf32, #tpu.memory_space<vmem>>, vector<8x128xf32>,
    %cst_14 = arith.constant 0.000000e+00 : f32
    %12 = vector.broadcast %cst_14 : f32 to vector<8x128xf32>
    %c0_15 = arith.constant 0 : index
    %c0_16 = arith.constant 0 : index
    %13 = vector.load %arg8[%c0_15, %c0_16] : memref<8x128xf32, #tpu.memory_space<vmem>>, vector<8x128xf32>
    tpu.vector_store %arg8[%c0_15, %c0_16], %12 {strides = array<i32>} : memref<8x128xf32, #tpu.memory_space<vmem>>, vector<8x128xf32>,
    %c0_i32 = arith.constant 0 : i32
    %c9_i32 = arith.constant 9 : i32
    %14 = arith.addi %c0_i32, %c9_i32 : i32
    %c1_i32 = arith.constant 1 : i32
    scf.for %arg9 = %c0_i32 to %14 step %c1_i32  : i32 {
      %c8_i32 = arith.constant 8 : i32
      %31 = arith.muli %arg9, %c8_i32 : i32
      %32 = tpu.assume_multiple %31, 8 : i32
      %33 = arith.index_cast %32 : i32 to index
      %c0_41 = arith.constant 0 : index
      %34 = vector.load %arg6[%33, %c0_41] : memref<72x512xf32, #tpu.memory_space<vmem>>, vector<8x512xf32>
      %c0_42 = arith.constant 0 : index
      %c0_43 = arith.constant 0 : index
      %35 = vector.load %arg7[%c0_42, %c0_43] : memref<8x128xf32, #tpu.memory_space<vmem>>, vector<8x128xf32>
      %cst_44 = arith.constant dense<0.000000e+00> : vector<8x512xf32>
      %36 = tpu.matmul %35, %3, %cst_44 {dimension_numbers = #tpu.dot_dimension_numbers<[1], [0], [0], [1], [0, 0, 1, 1], [], []>} : vector<8x128xf32>, vector<128x512xf32>, vector<8x512xf32> -> vector<8x512xf32>
      %37 = arith.addf %34, %36 : vector<8x512xf32>
      %38 = vector.extract_strided_slice %37 {offsets = [0, 0], sizes = [8, 128], strides = [1, 1]} : vector<8x512xf32> to vector<8x128xf32>
      %39 = arith.negf %38 : vector<8x128xf32>
      %40 = math.exp %39 : vector<8x128xf32>
      %cst_45 = arith.constant 1.000000e+00 : f32
      %41 = vector.broadcast %cst_45 : f32 to vector<8x128xf32>
      %42 = arith.addf %41, %40 : vector<8x128xf32>
      %43 = arith.divf %41, %42 : vector<8x128xf32>
      %44 = vector.extract_strided_slice %37 {offsets = [0, 128], sizes = [8, 128], strides = [1, 1]} : vector<8x512xf32> to vector<8x128xf32>
      %45 = arith.negf %44 : vector<8x128xf32>
      %46 = math.exp %45 : vector<8x128xf32>
      %cst_46 = arith.constant 1.000000e+00 : f32
      %47 = vector.broadcast %cst_46 : f32 to vector<8x128xf32>
      %48 = arith.addf %47, %46 : vector<8x128xf32>
      %49 = arith.divf %47, %48 : vector<8x128xf32>
      %50 = vector.extract_strided_slice %37 {offsets = [0, 256], sizes = [8, 128], strides = [1, 1]} : vector<8x512xf32> to vector<8x128xf32>
      %51 = math.tanh %50 : vector<8x128xf32>
      %52 = vector.extract_strided_slice %37 {offsets = [0, 384], sizes = [8, 128], strides = [1, 1]} : vector<8x512xf32> to vector<8x128xf32>
      %53 = arith.negf %52 : vector<8x128xf32>
      %54 = math.exp %53 : vector<8x128xf32>
      %cst_47 = arith.constant 1.000000e+00 : f32
      %55 = vector.broadcast %cst_47 : f32 to vector<8x128xf32>
      %56 = arith.addf %55, %54 : vector<8x128xf32>
      %57 = arith.divf %55, %56 : vector<8x128xf32>
      %c0_48 = arith.constant 0 : index
      %c0_49 = arith.constant 0 : index
      %58 = vector.load %arg8[%c0_48, %c0_49] : memref<8x128xf32, #tpu.memory_space<vmem>>, vector<8x128xf32>
      %59 = arith.mulf %49, %58 : vector<8x128xf32>
      %60 = arith.mulf %43, %51 : vector<8x128xf32>
      %61 = arith.addf %59, %60 : vector<8x128xf32>
      %62 = math.tanh %61 : vector<8x128xf32>
      %63 = arith.mulf %57, %62 : vector<8x128xf32>
      %c0_50 = arith.constant 0 : index
      %c0_51 = arith.constant 0 : index
      %64 = vector.load %arg8[%c0_50, %c0_51] : memref<8x128xf32, #tpu.memory_space<vmem>>, vector<8x128xf32>
      tpu.vector_store %arg8[%c0_50, %c0_51], %61 {strides = array<i32>} : memref<8x128xf32, #tpu.memory_space<vmem>>, vector<8x128xf32>,
      %c0_52 = arith.constant 0 : index
      %c0_53 = arith.constant 0 : index
      %65 = vector.load %arg7[%c0_52, %c0_53] : memref<8x128xf32, #tpu.memory_space<vmem>>, vector<8x128xf32>
      tpu.vector_store %arg7[%c0_52, %c0_53], %63 {strides = array<i32>} : memref<8x128xf32, #tpu.memory_space<vmem>>, vector<8x128xf32>,
      %66 = arith.index_cast %32 : i32 to index
      %c0_54 = arith.constant 0 : index
      %67 = vector.load %arg5[%66, %c0_54] : memref<72x128xf32, #tpu.memory_space<vmem>>, vector<8x128xf32>
      tpu.vector_store %arg5[%66, %c0_54], %63 {strides = array<i32>} : memref<72x128xf32, #tpu.memory_space<vmem>>, vector<8x128xf32>,
    }
    %c9_i32_17 = arith.constant 9 : i32
    %c0_18 = arith.constant 0 : index
    %c0_19 = arith.constant 0 : index
    %15 = vector.load %arg5[%c0_18, %c0_19] : memref<72x128xf32, #tpu.memory_space<vmem>>, vector<72x128xf32>
    %c0_20 = arith.constant 0 : index
    %c0_21 = arith.constant 0 : index
    %c0_22 = arith.constant 0 : index
    %16 = vector.load %arg2[%c0_20, %c0_21, %c0_22] : memref<1x128x512xf32, #tpu.memory_space<vmem>>, vector<1x128x512xf32>
    %17 = vector.shape_cast %16 : vector<1x128x512xf32> to vector<128x512xf32>
    %c1 = arith.constant 1 : index
    %c0_23 = arith.constant 0 : index
    %c0_24 = arith.constant 0 : index
    %18 = vector.load %arg3[%c1, %c0_23, %c0_24] : memref<2x128x512xf32, #tpu.memory_space<vmem>>, vector<1x128x512xf32>
    %19 = vector.shape_cast %18 : vector<1x128x512xf32> to vector<128x512xf32>
    %c1_25 = arith.constant 1 : index
    %c0_26 = arith.constant 0 : index
    %c0_27 = arith.constant 0 : index
    %20 = vector.load %arg4[%c1_25, %c0_26, %c0_27] : memref<2x1x512xf32, #tpu.memory_space<vmem>>, vector<1x1x512xf32>
    %21 = vector.shape_cast %20 : vector<1x1x512xf32> to vector<1x512xf32>
    %cst_28 = arith.constant dense<0.000000e+00> : vector<72x512xf32>
    %22 = tpu.matmul %15, %17, %cst_28 {dimension_numbers = #tpu.dot_dimension_numbers<[1], [0], [0], [1], [0, 0, 1, 1], [], []>} : vector<72x128xf32>, vector<128x512xf32>, vector<72x512xf32> -> vector<72x512xf32>
    %23 = vector.broadcast %21 : vector<1x512xf32> to vector<72x512xf32>
    %24 = arith.addf %22, %23 : vector<72x512xf32>
    %c0_29 = arith.constant 0 : index
    %c0_30 = arith.constant 0 : index
    %25 = vector.load %arg6[%c0_29, %c0_30] : memref<72x512xf32, #tpu.memory_space<vmem>>, vector<72x512xf32>
    tpu.vector_store %arg6[%c0_29, %c0_30], %24 {strides = array<i32>} : memref<72x512xf32, #tpu.memory_space<vmem>>, vector<72x512xf32>,
    %cst_31 = arith.constant 0.000000e+00 : f32
    %26 = vector.broadcast %cst_31 : f32 to vector<8x128xf32>
    %c0_32 = arith.constant 0 : index
    %c0_33 = arith.constant 0 : index
    %27 = vector.load %arg7[%c0_32, %c0_33] : memref<8x128xf32, #tpu.memory_space<vmem>>, vector<8x128xf32>
    tpu.vector_store %arg7[%c0_32, %c0_33], %26 {strides = array<i32>} : memref<8x128xf32, #tpu.memory_space<vmem>>, vector<8x128xf32>,
    %cst_34 = arith.constant 0.000000e+00 : f32
    %28 = vector.broadcast %cst_34 : f32 to vector<8x128xf32>
    %c0_35 = arith.constant 0 : index
    %c0_36 = arith.constant 0 : index
    %29 = vector.load %arg8[%c0_35, %c0_36] : memref<8x128xf32, #tpu.memory_space<vmem>>, vector<8x128xf32>
    tpu.vector_store %arg8[%c0_35, %c0_36], %28 {strides = array<i32>} : memref<8x128xf32, #tpu.memory_space<vmem>>, vector<8x128xf32>,
    %c0_i32_37 = arith.constant 0 : i32
    %c9_i32_38 = arith.constant 9 : i32
    %30 = arith.addi %c0_i32_37, %c9_i32_38 : i32
    %c1_i32_39 = arith.constant 1 : i32
    scf.for %arg9 = %c0_i32_37 to %30 step %c1_i32_39  : i32 {
      %c8_i32 = arith.constant 8 : i32
      %31 = arith.muli %arg9, %c8_i32 : i32
      %32 = tpu.assume_multiple %31, 8 : i32
      %33 = arith.index_cast %32 : i32 to index
      %c0_41 = arith.constant 0 : index
      %34 = vector.load %arg6[%33, %c0_41] : memref<72x512xf32, #tpu.memory_space<vmem>>, vector<8x512xf32>
      %c0_42 = arith.constant 0 : index
      %c0_43 = arith.constant 0 : index
      %35 = vector.load %arg7[%c0_42, %c0_43] : memref<8x128xf32, #tpu.memory_space<vmem>>, vector<8x128xf32>
      %cst_44 = arith.constant dense<0.000000e+00> : vector<8x512xf32>
      %36 = tpu.matmul %35, %19, %cst_44 {dimension_numbers = #tpu.dot_dimension_numbers<[1], [0], [0], [1], [0, 0, 1, 1], [], []>} : vector<8x128xf32>, vector<128x512xf32>, vector<8x512xf32> -> vector<8x512xf32>
      %37 = arith.addf %34, %36 : vector<8x512xf32>
      %38 = vector.extract_strided_slice %37 {offsets = [0, 0], sizes = [8, 128], strides = [1, 1]} : vector<8x512xf32> to vector<8x128xf32>
      %39 = arith.negf %38 : vector<8x128xf32>
      %40 = math.exp %39 : vector<8x128xf32>
      %cst_45 = arith.constant 1.000000e+00 : f32
      %41 = vector.broadcast %cst_45 : f32 to vector<8x128xf32>
      %42 = arith.addf %41, %40 : vector<8x128xf32>
      %43 = arith.divf %41, %42 : vector<8x128xf32>
      %44 = vector.extract_strided_slice %37 {offsets = [0, 128], sizes = [8, 128], strides = [1, 1]} : vector<8x512xf32> to vector<8x128xf32>
      %45 = arith.negf %44 : vector<8x128xf32>
      %46 = math.exp %45 : vector<8x128xf32>
      %cst_46 = arith.constant 1.000000e+00 : f32
      %47 = vector.broadcast %cst_46 : f32 to vector<8x128xf32>
      %48 = arith.addf %47, %46 : vector<8x128xf32>
      %49 = arith.divf %47, %48 : vector<8x128xf32>
      %50 = vector.extract_strided_slice %37 {offsets = [0, 256], sizes = [8, 128], strides = [1, 1]} : vector<8x512xf32> to vector<8x128xf32>
      %51 = math.tanh %50 : vector<8x128xf32>
      %52 = vector.extract_strided_slice %37 {offsets = [0, 384], sizes = [8, 128], strides = [1, 1]} : vector<8x512xf32> to vector<8x128xf32>
      %53 = arith.negf %52 : vector<8x128xf32>
      %54 = math.exp %53 : vector<8x128xf32>
      %cst_47 = arith.constant 1.000000e+00 : f32
      %55 = vector.broadcast %cst_47 : f32 to vector<8x128xf32>
      %56 = arith.addf %55, %54 : vector<8x128xf32>
      %57 = arith.divf %55, %56 : vector<8x128xf32>
      %c0_48 = arith.constant 0 : index
      %c0_49 = arith.constant 0 : index
      %58 = vector.load %arg8[%c0_48, %c0_49] : memref<8x128xf32, #tpu.memory_space<vmem>>, vector<8x128xf32>
      %59 = arith.mulf %49, %58 : vector<8x128xf32>
      %60 = arith.mulf %43, %51 : vector<8x128xf32>
      %61 = arith.addf %59, %60 : vector<8x128xf32>
      %62 = math.tanh %61 : vector<8x128xf32>
      %63 = arith.mulf %57, %62 : vector<8x128xf32>
      %c0_50 = arith.constant 0 : index
      %c0_51 = arith.constant 0 : index
      %64 = vector.load %arg8[%c0_50, %c0_51] : memref<8x128xf32, #tpu.memory_space<vmem>>, vector<8x128xf32>
      tpu.vector_store %arg8[%c0_50, %c0_51], %61 {strides = array<i32>} : memref<8x128xf32, #tpu.memory_space<vmem>>, vector<8x128xf32>,
      %c0_52 = arith.constant 0 : index
      %c0_53 = arith.constant 0 : index
      %65 = vector.load %arg7[%c0_52, %c0_53] : memref<8x128xf32, #tpu.memory_space<vmem>>, vector<8x128xf32>
      tpu.vector_store %arg7[%c0_52, %c0_53], %63 {strides = array<i32>} : memref<8x128xf32, #tpu.memory_space<vmem>>, vector<8x128xf32>,
      %66 = arith.index_cast %32 : i32 to index
      %c0_54 = arith.constant 0 : index
      %67 = vector.load %arg5[%66, %c0_54] : memref<72x128xf32, #tpu.memory_space<vmem>>, vector<8x128xf32>
      tpu.vector_store %arg5[%66, %c0_54], %63 {strides = array<i32>} : memref<72x128xf32, #tpu.memory_space<vmem>>, vector<8x128xf32>,
    }
    %c9_i32_40 = arith.constant 9 : i32
    return
  }
}

</mosaic_0001>

<bundles_post_ra>
// kernel: tpu_custom_call.1
= control target key start
LH: loop header
LB: loop body
LE: loop exit
PB: predicated region body
PF: predicated region fallthrough
CT: control target
= control target key end

     0   :  { %10 = vsyncpa [#allocation6], 0  ;;  %s2012_s0 = inlined_call_operand.hbm [shape: f32[72,128], index: 0, kind: input, shape index: {}]   ;;  %s2013_s1 = inlined_call_operand.hbm [shape: f32[128,512], index: 1, kind: input, shape index: {}]   ;;  %s2014_s2 = inlined_call_operand.hbm [shape: f32[1,128,512], index: 2, kind: input, shape index: {}]   ;;  %s2015_s3 = inlined_call_operand.hbm [shape: f32[2,128,512], index: 3, kind: input, shape index: {}]   ;;  %s2016_s4 = inlined_call_operand.hbm [shape: f32[2,1,512], index: 4, kind: input, shape index: {}]   ;;  %s2017_s5 = inlined_call_operand.hbm [shape: f32[72,128], index: 5, kind: output, shape index: {}]  }
   0x1   :  { %11 = vsyncpa [#allocation9], 0 }
   0x2   :  { %12 = vsyncpa [#allocation12], 0  ;;  %s31_s20 = sshll.u32 %s2013_s1, 4  ;;  %s32_s20 = int_to_ptr.hbm [resolvable:$true] %s31_s20 }
   0x3   :  { %13 = vsyncpa [#allocation7], 0  ;;  %s1443_s21 = smov [#allocation8]   ;;  %s57_s25 = sshll.u32 %s2015_s3, 4  ;;  %s58_s25 = int_to_ptr.hbm [resolvable:$true] %s57_s25 }
   0x4   :  { %s33_s22 = sshll.u32 %s1443_s21, 4  ;;  %s1444_s26 = smov 512   ;;  %s34_s22 = int_to_ptr.vmem [resolvable:$true] %s33_s22 }
   0x5   :  { %s1445_s27 = smov 32   ;;  %s1446_s28 = smov [#allocation11]  }
   0x6   :  { %39 = dma.hbm_to_vmem [thread:$0]  %s32_s20, 8192, %s34_s22, [#allocation9], %s1444_s26, %s1444_s26, %s1445_s27  }
   0x7   :  { %s59_s29 = sshll.u32 %s1446_s28, 4  ;;  %s18_s7 = sshll.u32 %s2012_s0, 4  ;;  %s60_s29 = int_to_ptr.vmem [resolvable:$true] %s59_s29  ;;  %s19_s7 = int_to_ptr.hbm [resolvable:$true] %s18_s7 }
   0x8   :  { %65 = dma.hbm_to_vmem [thread:$0]  %s58_s25, 16384, %s60_s29, [#allocation12], %s1444_s26, %s1444_s26, %s1445_s27  }
   0x9   :  { %s1447_s1 = smov [#allocation5]   ;;  %s44_s3 = sshll.u32 %s2014_s2, 4  ;;  %s45_s3 = int_to_ptr.hbm [resolvable:$true] %s44_s3 }
   0xa   :  { %s20_s8 = sshll.u32 %s1447_s1, 4  ;;  %s1448_s11 = smov 128   ;;  %s21_s8 = int_to_ptr.vmem [resolvable:$true] %s20_s8 }
   0xb   :  { %s1449_s12 = smov 8   ;;  %s1450_s13 = smov [#allocation10]  }
   0xc   :  { %26 = dma.hbm_to_vmem [thread:$0]  %s19_s7, 1152, %s21_s8, [#allocation6], %s1448_s11, %s1448_s11, %s1449_s12  }
   0xd   :  { %s46_s14 = sshll.u32 %s1450_s13, 4  ;;  %s70_s16 = sshll.u32 %s2016_s4, 4  ;;  %s47_s14 = int_to_ptr.vmem [resolvable:$true] %s46_s14  ;;  %s71_s16 = int_to_ptr.hbm [resolvable:$true] %s70_s16 }
   0xe   :  { %52 = dma.hbm_to_vmem [thread:$0]  %s45_s3, 8192, %s47_s14, [#allocation9], %s1444_s26, %s1444_s26, %s1445_s27  }
   0xf   :  { %s1451_s17 = smov [#allocation13]   ;;  %s1452_s2 = smov 64  }
  0x10   :  { %s72_s18 = sshll.u32 %s1451_s17, 4  ;;  %s1453_s19 = smov 4   ;;  %s73_s18 = int_to_ptr.vmem [resolvable:$true] %s72_s18 }
  0x11   :  { %78 = dma.hbm_to_vmem [thread:$0]  %s71_s16, 128, %s73_s18, [#allocation12], %s1452_s2, %s1452_s2, %s1453_s19  }
  0x12   :  { %1427 = dma.done.wait [#allocation6], 1152  }
  0x13   :  { %1428 = vsyncadd [#allocation6], 4294966144 }
  0x14   :  { %1429 = dma.done.wait [#allocation9], 16384  }
  0x15   :  { %1430 = vsyncadd [#allocation9], 4294950912 }
  0x16   :  { %1431 = dma.done.wait [#allocation12], 16512  }
  0x17   :  { %1432 = vsyncadd [#allocation12], 4294950784  ;;  %v2018_v0 = vmov 0.0   ;;  %v1506_v1 = vld [vmem:[#allocation11] sm:$0xff]  ;;  %v1508_v2 = vld [vmem:[#allocation11 + $0x8] sm:$0xff]  ;;  %s1678_s4 = smov 0  }
  0x18   :  { %458 = vst [vmem:[#allocation3] sm:$0xff] %v2018_v0  ;;  %v1510_v3 = vld [vmem:[#allocation11 + $0x10] sm:$0xff]  ;;  %v1512_v4 = vld [vmem:[#allocation11 + $0x18] sm:$0xff]  ;;  %v1514_v5 = vld [vmem:[#allocation11 + $0x20] sm:$0xff] }
  0x19   :  { %459 = vst [vmem:[#allocation4] sm:$0xff] %v2018_v0  ;;  %v1516_v6 = vld [vmem:[#allocation11 + $0x28] sm:$0xff]  ;;  %v1518_v7 = vld [vmem:[#allocation11 + $0x30] sm:$0xff]  ;;  %v1520_v8 = vld [vmem:[#allocation11 + $0x38] sm:$0xff] }
  0x1a   :  { %2020 = vst [vmem:[#allocation19_spill] sm:$0xff] %v1506_v1  ;;  %v1522_v9 = vld [vmem:[#allocation11 + $0x40] sm:$0xff]  ;;  %v1524_v10 = vld [vmem:[#allocation11 + $0x48] sm:$0xff]  ;;  %v1526_v11 = vld [vmem:[#allocation11 + $0x50] sm:$0xff] }
  0x1b   :  { %2021 = vst [vmem:[#allocation20_spill] sm:$0xff] %v1508_v2  ;;  %v1528_v12 = vld [vmem:[#allocation11 + $0x58] sm:$0xff]  ;;  %v1530_v13 = vld [vmem:[#allocation11 + $0x60] sm:$0xff]  ;;  %v1532_v14 = vld [vmem:[#allocation11 + $0x68] sm:$0xff] }
  0x1c   :  { %2022 = vst [vmem:[#allocation21_spill] sm:$0xff] %v1510_v3  ;;  %v1534_v15 = vld [vmem:[#allocation11 + $0x70] sm:$0xff]  ;;  %v1536_v16 = vld [vmem:[#allocation11 + $0x78] sm:$0xff]  ;;  %v1538_v17 = vld [vmem:[#allocation11 + $0x80] sm:$0xff] }
  0x1d   :  { %2023 = vst [vmem:[#allocation22_spill] sm:$0xff] %v1512_v4  ;;  %v1540_v18 = vld [vmem:[#allocation11 + $0x88] sm:$0xff]  ;;  %v1542_v19 = vld [vmem:[#allocation11 + $0x90] sm:$0xff]  ;;  %v1544_v20 = vld [vmem:[#allocation11 + $0x98] sm:$0xff] }
  0x1e   :  { %2024 = vst [vmem:[#allocation23_spill] sm:$0xff] %v1514_v5  ;;  %v1546_v21 = vld [vmem:[#allocation11 + $0xa0] sm:$0xff]  ;;  %v1548_v22 = vld [vmem:[#allocation11 + $0xa8] sm:$0xff]  ;;  %v1550_v23 = vld [vmem:[#allocation11 + $0xb0] sm:$0xff] }
  0x1f   :  { %2025 = vst [vmem:[#allocation24_spill] sm:$0xff] %v1516_v6  ;;  %v1552_v24 = vld [vmem:[#allocation11 + $0xb8] sm:$0xff]  ;;  %v1554_v25 = vld [vmem:[#allocation11 + $0xc0] sm:$0xff]  ;;  %v1556_v26 = vld [vmem:[#allocation11 + $0xc8] sm:$0xff] }
  0x20   :  { %2026 = vst [vmem:[#allocation25_spill] sm:$0xff] %v1518_v7  ;;  %v1558_v27 = vld [vmem:[#allocation11 + $0xd0] sm:$0xff]  ;;  %v1560_v28 = vld [vmem:[#allocation11 + $0xd8] sm:$0xff]  ;;  %v1562_v29 = vld [vmem:[#allocation11 + $0xe0] sm:$0xff] }
  0x21   :  { %2027 = vst [vmem:[#allocation26_spill] sm:$0xff] %v1520_v8  ;;  %v1564_v30 = vld [vmem:[#allocation11 + $0xe8] sm:$0xff]  ;;  %v1566_v31 = vld [vmem:[#allocation11 + $0xf0] sm:$0xff]  ;;  %v1568_v32 = vld [vmem:[#allocation11 + $0xf8] sm:$0xff] }
  0x22   :  { %2028 = vst [vmem:[#allocation27_spill] sm:$0xff] %v1522_v9  ;;  %v1570_v33 = vld [vmem:[#allocation11 + $0x100] sm:$0xff]  ;;  %v1572_v34 = vld [vmem:[#allocation11 + $0x108] sm:$0xff]  ;;  %v1574_v35 = vld [vmem:[#allocation11 + $0x110] sm:$0xff] }
  0x23   :  { %2029 = vst [vmem:[#allocation28_spill] sm:$0xff] %v1524_v10  ;;  %v1576_v36 = vld [vmem:[#allocation11 + $0x118] sm:$0xff]  ;;  %v1578_v37 = vld [vmem:[#allocation11 + $0x120] sm:$0xff]  ;;  %v1580_v38 = vld [vmem:[#allocation11 + $0x128] sm:$0xff] }
  0x24   :  { %2030 = vst [vmem:[#allocation29_spill] sm:$0xff] %v1526_v11  ;;  %v1582_v39 = vld [vmem:[#allocation11 + $0x130] sm:$0xff]  ;;  %v1584_v40 = vld [vmem:[#allocation11 + $0x138] sm:$0xff]  ;;  %v1586_v41 = vld [vmem:[#allocation11 + $0x140] sm:$0xff] }
  0x25   :  { %2031 = vst [vmem:[#allocation30_spill] sm:$0xff] %v1528_v12  ;;  %v1588_v42 = vld [vmem:[#allocation11 + $0x148] sm:$0xff]  ;;  %v1590_v43 = vld [vmem:[#allocation11 + $0x150] sm:$0xff]  ;;  %v1592_v44 = vld [vmem:[#allocation11 + $0x158] sm:$0xff] }
  0x26   :  { %2032 = vst [vmem:[#allocation31_spill] sm:$0xff] %v1530_v13  ;;  %v1594_v45 = vld [vmem:[#allocation11 + $0x160] sm:$0xff]  ;;  %v1596_v46 = vld [vmem:[#allocation11 + $0x168] sm:$0xff]  ;;  %v1598_v47 = vld [vmem:[#allocation11 + $0x170] sm:$0xff] }
  0x27   :  { %2033 = vst [vmem:[#allocation32_spill] sm:$0xff] %v1532_v14  ;;  %v1600_v48 = vld [vmem:[#allocation11 + $0x178] sm:$0xff]  ;;  %v1602_v49 = vld [vmem:[#allocation11 + $0x180] sm:$0xff]  ;;  %v1604_v50 = vld [vmem:[#allocation11 + $0x188] sm:$0xff] }
  0x28   :  { %2034 = vst [vmem:[#allocation33_spill] sm:$0xff] %v1534_v15  ;;  %v1606_v51 = vld [vmem:[#allocation11 + $0x190] sm:$0xff]  ;;  %v1608_v52 = vld [vmem:[#allocation11 + $0x198] sm:$0xff]  ;;  %v1610_v53 = vld [vmem:[#allocation11 + $0x1a0] sm:$0xff] }
  0x29   :  { %2035 = vst [vmem:[#allocation34_spill] sm:$0xff] %v1536_v16  ;;  %v1612_v54 = vld [vmem:[#allocation11 + $0x1a8] sm:$0xff]  ;;  %v1614_v55 = vld [vmem:[#allocation11 + $0x1b0] sm:$0xff]  ;;  %v1616_v56 = vld [vmem:[#allocation11 + $0x1b8] sm:$0xff] }
  0x2a   :  { %2036 = vst [vmem:[#allocation35_spill] sm:$0xff] %v1538_v17  ;;  %v1618_v57 = vld [vmem:[#allocation11 + $0x1c0] sm:$0xff]  ;;  %v1620_v58 = vld [vmem:[#allocation11 + $0x1c8] sm:$0xff]  ;;  %v1622_v59 = vld [vmem:[#allocation11 + $0x1d0] sm:$0xff] }
  0x2b   :  { %2037 = vst [vmem:[#allocation36_spill] sm:$0xff] %v1540_v18  ;;  %v1624_v60 = vld [vmem:[#allocation11 + $0x1d8] sm:$0xff]  ;;  %v1626_v61 = vld [vmem:[#allocation11 + $0x1e0] sm:$0xff]  ;;  %v1628_v62 = vld [vmem:[#allocation11 + $0x1e8] sm:$0xff] }
  0x2c   :  { %2038 = vst [vmem:[#allocation37_spill] sm:$0xff] %v1542_v19  ;;  %v1630_v63 = vld [vmem:[#allocation11 + $0x1f0] sm:$0xff]  ;;  %v1632_v0 = vld [vmem:[#allocation11 + $0x1f8] sm:$0xff]  ;;  %v168_v6 = vld [vmem:[#allocation8 + $0x1e0] sm:$0xff] }
  0x2d   :  { %2039 = vst [vmem:[#allocation38_spill] sm:$0xff] %v1544_v20  ;;  %v170_v3 = vld [vmem:[#allocation8 + $0x1f0] sm:$0xff]  ;;  %v171_v4 = vld [vmem:[#allocation8 + $0x1f8] sm:$0xff]  ;;  %v169_v5 = vld [vmem:[#allocation8 + $0x1e8] sm:$0xff]  ;;  %246 = vmatpush.msra.mxu0 %v168_v6 }
  0x2e   :  { %2040 = vst [vmem:[#allocation39_spill] sm:$0xff] %v1546_v21  ;;  %334 = vmatpush.msra.mxu2 %v170_v3  ;;  %378 = vmatpush.msra.mxu3 %v171_v4  ;;  %v166_v2 = vld [vmem:[#allocation8 + $0x1d0] sm:$0xff]  ;;  %v167_v1 = vld [vmem:[#allocation8 + $0x1d8] sm:$0xff]  ;;  %v164_v11 = vld [vmem:[#allocation8 + $0x1c0] sm:$0xff] }
  0x2f   :  { %2041 = vst [vmem:[#allocation40_spill] sm:$0xff] %v1548_v22  ;;  %v162_v7 = vld [vmem:[#allocation8 + $0x1b0] sm:$0xff]  ;;  %v163_v8 = vld [vmem:[#allocation8 + $0x1b8] sm:$0xff]  ;;  %290 = vmatpush.msra.mxu1 %v169_v5  ;;  %v165_v9 = vld [vmem:[#allocation8 + $0x1c8] sm:$0xff]  ;;  %247 = vmatpush.msra.mxu0 %v164_v11 }
  0x30   :  { %2042 = vst [vmem:[#allocation41_spill] sm:$0xff] %v1550_v23  ;;  %335 = vmatpush.msra.mxu2 %v166_v2  ;;  %379 = vmatpush.msra.mxu3 %v167_v1  ;;  %v158_v12 = vld [vmem:[#allocation8 + $0x190] sm:$0xff]  ;;  %v159_v10 = vld [vmem:[#allocation8 + $0x198] sm:$0xff]  ;;  %v160_v15 = vld [vmem:[#allocation8 + $0x1a0] sm:$0xff] }
  0x31   :  { %2043 = vst [vmem:[#allocation42_spill] sm:$0xff] %v1552_v24  ;;  %v161_v16 = vld [vmem:[#allocation8 + $0x1a8] sm:$0xff]  ;;  %291 = vmatpush.msra.mxu1 %v165_v9  ;;  %v154_v3 = vld [vmem:[#allocation8 + $0x170] sm:$0xff]  ;;  %v155_v4 = vld [vmem:[#allocation8 + $0x178] sm:$0xff]  ;;  %248 = vmatpush.msra.mxu0 %v160_v15 }
  0x32   :  { %2044 = vst [vmem:[#allocation43_spill] sm:$0xff] %v1554_v25  ;;  %336 = vmatpush.msra.mxu2 %v162_v7  ;;  %380 = vmatpush.msra.mxu3 %v163_v8  ;;  %v156_v14 = vld [vmem:[#allocation8 + $0x180] sm:$0xff]  ;;  %v157_v13 = vld [vmem:[#allocation8 + $0x188] sm:$0xff]  ;;  %v150_v1 = vld [vmem:[#allocation8 + $0x150] sm:$0xff] }
  0x33   :  { %2045 = vst [vmem:[#allocation44_spill] sm:$0xff] %v1556_v26  ;;  %292 = vmatpush.msra.mxu1 %v161_v16  ;;  %v151_v2 = vld [vmem:[#allocation8 + $0x158] sm:$0xff]  ;;  %v152_v5 = vld [vmem:[#allocation8 + $0x160] sm:$0xff]  ;;  %v153_v6 = vld [vmem:[#allocation8 + $0x168] sm:$0xff]  ;;  %249 = vmatpush.msra.mxu0 %v156_v14 }
  0x34   :  { %2046 = vst [vmem:[#allocation45_spill] sm:$0xff] %v1632_v0  ;;  %337 = vmatpush.msra.mxu2 %v158_v12  ;;  %381 = vmatpush.msra.mxu3 %v159_v10  ;;  %v146_v7 = vld [vmem:[#allocation8 + $0x130] sm:$0xff]  ;;  %v147_v8 = vld [vmem:[#allocation8 + $0x138] sm:$0xff]  ;;  %v148_v9 = vld [vmem:[#allocation8 + $0x140] sm:$0xff] }
  0x35   :  { %293 = vmatpush.msra.mxu1 %v157_v13  ;;  %v149_v11 = vld [vmem:[#allocation8 + $0x148] sm:$0xff]  ;;  %250 = vmatpush.msra.mxu0 %v152_v5  ;;  %v142_v10 = vld [vmem:[#allocation8 + $0x110] sm:$0xff]  ;;  %v143_v12 = vld [vmem:[#allocation8 + $0x118] sm:$0xff] }
  0x36   :  { %338 = vmatpush.msra.mxu2 %v154_v3  ;;  %382 = vmatpush.msra.mxu3 %v155_v4  ;;  %v144_v15 = vld [vmem:[#allocation8 + $0x120] sm:$0xff]  ;;  %v145_v16 = vld [vmem:[#allocation8 + $0x128] sm:$0xff]  ;;  %v138_v3 = vld [vmem:[#allocation8 + $0xf0] sm:$0xff] }
  0x37   :  { %294 = vmatpush.msra.mxu1 %v153_v6  ;;  %251 = vmatpush.msra.mxu0 %v148_v9  ;;  %v139_v4 = vld [vmem:[#allocation8 + $0xf8] sm:$0xff]  ;;  %v140_v13 = vld [vmem:[#allocation8 + $0x100] sm:$0xff]  ;;  %v141_v14 = vld [vmem:[#allocation8 + $0x108] sm:$0xff] }
  0x38   :  { %339 = vmatpush.msra.mxu2 %v150_v1  ;;  %383 = vmatpush.msra.mxu3 %v151_v2  ;;  %v134_v1 = vld [vmem:[#allocation8 + $0xd0] sm:$0xff]  ;;  %v135_v2 = vld [vmem:[#allocation8 + $0xd8] sm:$0xff]  ;;  %v136_v5 = vld [vmem:[#allocation8 + $0xe0] sm:$0xff] }
  0x39   :  { %295 = vmatpush.msra.mxu1 %v149_v11  ;;  %252 = vmatpush.msra.mxu0 %v144_v15  ;;  %v137_v6 = vld [vmem:[#allocation8 + $0xe8] sm:$0xff]  ;;  %v132_v9 = vld [vmem:[#allocation8 + $0xc0] sm:$0xff] }
  0x3a   :  { %340 = vmatpush.msra.mxu2 %v146_v7  ;;  %384 = vmatpush.msra.mxu3 %v147_v8  ;;  %v130_v7 = vld [vmem:[#allocation8 + $0xb0] sm:$0xff]  ;;  %v131_v8 = vld [vmem:[#allocation8 + $0xb8] sm:$0xff]  ;;  %v133_v11 = vld [vmem:[#allocation8 + $0xc8] sm:$0xff] }
  0x3b   :  { %296 = vmatpush.msra.mxu1 %v145_v16  ;;  %253 = vmatpush.msra.mxu0 %v140_v13  ;;  %v128_v15 = vld [vmem:[#allocation8 + $0xa0] sm:$0xff]  ;;  %v129_v16 = vld [vmem:[#allocation8 + $0xa8] sm:$0xff] }
  0x3c   :  { %341 = vmatpush.msra.mxu2 %v142_v10  ;;  %385 = vmatpush.msra.mxu3 %v143_v12  ;;  %v126_v10 = vld [vmem:[#allocation8 + $0x90] sm:$0xff]  ;;  %v127_v12 = vld [vmem:[#allocation8 + $0x98] sm:$0xff]  ;;  %v124_v13 = vld [vmem:[#allocation8 + $0x80] sm:$0xff] }
  0x3d   :  { %297 = vmatpush.msra.mxu1 %v141_v14  ;;  %254 = vmatpush.msra.mxu0 %v136_v5  ;;  %v125_v14 = vld [vmem:[#allocation8 + $0x88] sm:$0xff]  ;;  %v120_v5 = vld [vmem:[#allocation8 + $0x60] sm:$0xff] }
  0x3e   :  { %342 = vmatpush.msra.mxu2 %v138_v3  ;;  %386 = vmatpush.msra.mxu3 %v139_v4  ;;  %v122_v3 = vld [vmem:[#allocation8 + $0x70] sm:$0xff]  ;;  %v123_v4 = vld [vmem:[#allocation8 + $0x78] sm:$0xff] }
  0x3f   :  { %298 = vmatpush.msra.mxu1 %v137_v6  ;;  %255 = vmatpush.msra.mxu0 %v132_v9  ;;  %v121_v6 = vld [vmem:[#allocation8 + $0x68] sm:$0xff]  ;;  %v116_v9 = vld [vmem:[#allocation8 + $0x40] sm:$0xff] }
  0x40   :  { %343 = vmatpush.msra.mxu2 %v134_v1  ;;  %387 = vmatpush.msra.mxu3 %v135_v2  ;;  %v118_v1 = vld [vmem:[#allocation8 + $0x50] sm:$0xff]  ;;  %v119_v2 = vld [vmem:[#allocation8 + $0x58] sm:$0xff] }
  0x41   :  { %299 = vmatpush.msra.mxu1 %v133_v11  ;;  %256 = vmatpush.msra.mxu0 %v128_v15  ;;  %v117_v11 = vld [vmem:[#allocation8 + $0x48] sm:$0xff]  ;;  %v99_v15 = vld [vmem:[#allocation5] sm:$0xff] }
  0x42   :  { %344 = vmatpush.msra.mxu2 %v130_v7  ;;  %388 = vmatpush.msra.mxu3 %v131_v8  ;;  %v114_v7 = vld [vmem:[#allocation8 + $0x30] sm:$0xff]  ;;  %v115_v8 = vld [vmem:[#allocation8 + $0x38] sm:$0xff] }
  0x43   :  { %300 = vmatpush.msra.mxu1 %v129_v16  ;;  %257 = vmatpush.msra.mxu0 %v124_v13  ;;  %v112_v16 = vld [vmem:[#allocation8 + $0x20] sm:$0xff]  ;;  %v109_v13 = vld [vmem:[#allocation8 + $0x8] sm:$0xff] }
  0x44   :  { %345 = vmatpush.msra.mxu2 %v126_v10  ;;  %389 = vmatpush.msra.mxu3 %v127_v12  ;;  %v110_v10 = vld [vmem:[#allocation8 + $0x10] sm:$0xff]  ;;  %v111_v12 = vld [vmem:[#allocation8 + $0x18] sm:$0xff] }
  0x45   :  { %301 = vmatpush.msra.mxu1 %v125_v14  ;;  %258 = vmatpush.msra.mxu0 %v120_v5  ;;  %v100_v14 = vld [vmem:[#allocation5 + $0x8] sm:$0xff]  ;;  %v103_v5 = vld [vmem:[#allocation5 + $0x20] sm:$0xff] }
  0x46   :  { %346 = vmatpush.msra.mxu2 %v122_v3  ;;  %390 = vmatpush.msra.mxu3 %v123_v4  ;;  %v113_v3 = vld [vmem:[#allocation8 + $0x28] sm:$0xff]  ;;  %v108_v4 = vld [vmem:[#allocation8] sm:$0xff] }
  0x47   :  { %302 = vmatpush.msra.mxu1 %v121_v6  ;;  %259 = vmatpush.msra.mxu0 %v116_v9  ;;  %v104_v6 = vld [vmem:[#allocation5 + $0x28] sm:$0xff]  ;;  %v107_v9 = vld [vmem:[#allocation5 + $0x40] sm:$0xff] }
  0x48   :  { %347 = vmatpush.msra.mxu2 %v118_v1  ;;  %391 = vmatpush.msra.mxu3 %v119_v2  ;;  %v101_v1 = vld [vmem:[#allocation5 + $0x10] sm:$0xff]  ;;  %v102_v2 = vld [vmem:[#allocation5 + $0x18] sm:$0xff] }
  0x49   :  { %303 = vmatpush.msra.mxu1 %v117_v11  ;;  %260 = vmatpush.msra.mxu0 %v112_v16  ;;  %v236_v11 = vld [vmem:[#allocation13] sm:$0xf] }
  0x4a   :  { %348 = vmatpush.msra.mxu2 %v114_v7  ;;  %392 = vmatpush.msra.mxu3 %v115_v8  ;;  %v105_v7 = vld [vmem:[#allocation5 + $0x30] sm:$0xff]  ;;  %v106_v8 = vld [vmem:[#allocation5 + $0x38] sm:$0xff]  ;;  %v1640_v16 = vperm.slane %v236_v11, 3 }
  0x4b   :  { %304 = vmatpush.msra.mxu1 %v113_v3  ;;  %261 = vmatpush.msra.mxu0 %v108_v4 }
  0x4c   :  { %349 = vmatpush.msra.mxu2 %v110_v10  ;;  %393 = vmatpush.msra.mxu3 %v111_v12  ;;  %v1634_v10 = vperm.slane %v236_v11, 0  ;;  %v1636_v12 = vperm.slane %v236_v11, 1 }
  0x4d   :  { %350 = vmatmul.f32.vlgmr.msra.gmra.mxu2 %v99_v15  ;;  %394 = vmatmul.f32.vlgmr.msra.gmra.mxu3 %v99_v15 }
  0x4e   :  { %305 = vmatpush.msra.mxu1 %v109_v13  ;;  %262 = vmatmul.f32.vlgmr.msra.gmra.mxu0 %v99_v15 }
  0x4f   :  { %306 = vmatmul.f32.vlgmr.msra.gmra.mxu1 %v99_v15  ;;  %v1638_v15 = vperm.slane %v236_v11, 2 }
  0x55   :  { %353 = vmatmul.f32.gmra.mxu2 %v100_v14  ;;  %397 = vmatmul.f32.gmra.mxu3 %v100_v14 }
  0x56   :  { %265 = vmatmul.f32.gmra.mxu0 %v100_v14 }
  0x57   :  { %309 = vmatmul.f32.gmra.mxu1 %v100_v14 }
  0x5d   :  { %356 = vmatmul.f32.gmra.mxu2 %v101_v1  ;;  %400 = vmatmul.f32.gmra.mxu3 %v101_v1 }
  0x5e   :  { %268 = vmatmul.f32.gmra.mxu0 %v101_v1 }
  0x5f   :  { %312 = vmatmul.f32.gmra.mxu1 %v101_v1 }
  0x65   :  { %359 = vmatmul.f32.gmra.mxu2 %v102_v2  ;;  %403 = vmatmul.f32.gmra.mxu3 %v102_v2 }
  0x66   :  { %271 = vmatmul.f32.gmra.mxu0 %v102_v2 }
  0x67   :  { %315 = vmatmul.f32.gmra.mxu1 %v102_v2 }
  0x6d   :  { %362 = vmatmul.f32.gmra.mxu2 %v103_v5  ;;  %406 = vmatmul.f32.gmra.mxu3 %v103_v5 }
  0x6e   :  { %274 = vmatmul.f32.gmra.mxu0 %v103_v5 }
  0x6f   :  { %318 = vmatmul.f32.gmra.mxu1 %v103_v5 }
  0x75   :  { %365 = vmatmul.f32.gmra.mxu2 %v104_v6  ;;  %409 = vmatmul.f32.gmra.mxu3 %v104_v6 }
  0x76   :  { %277 = vmatmul.f32.gmra.mxu0 %v104_v6 }
  0x77   :  { %321 = vmatmul.f32.gmra.mxu1 %v104_v6 }
  0x7d   :  { %368 = vmatmul.f32.gmra.mxu2 %v105_v7  ;;  %412 = vmatmul.f32.gmra.mxu3 %v105_v7 }
  0x7e   :  { %280 = vmatmul.f32.gmra.mxu0 %v105_v7 }
  0x7f   :  { %324 = vmatmul.f32.gmra.mxu1 %v105_v7 }
  0x85   :  { %371 = vmatmul.f32.gmra.mxu2 %v106_v8  ;;  %415 = vmatmul.f32.gmra.mxu3 %v106_v8 }
  0x86   :  { %283 = vmatmul.f32.gmra.mxu0 %v106_v8 }
  0x87   :  { %327 = vmatmul.f32.gmra.mxu1 %v106_v8 }
  0x8d   :  { %374 = vmatmul.f32.gmra.mxu2 %v107_v9  ;;  %418 = vmatmul.f32.gmra.mxu3 %v107_v9 }
  0x8e   :  { %286 = vmatmul.f32.gmra.mxu0 %v107_v9 }
  0x8f   :  { %330 = vmatmul.f32.gmra.mxu1 %v107_v9 }
  0xcb   :  { %v263_v3 = vpop.f32.mrf.mxu0 }
  0xcc   :  { %v307_v4 = vpop.f32.mrf.mxu1  ;;  %v264_v13 = vadd.f32 %v263_v3, %v1634_v10 }
  0xcd   :  { %v308_v14 = vadd.f32 %v307_v4, %v1636_v12 }
  0xce   :  { %422 = vst [vmem:[#allocation2] sm:$0xff] %v264_v13 }
  0xcf   :  { %423 = vst [vmem:[#allocation2 + $0x8] sm:$0xff] %v308_v14 }
  0xd0   :  { %v351_v1 = vpop.f32.mrf.mxu2  ;;  %v395_v2 = vpop.f32.mrf.mxu3 }
  0xd1   :  { %v352_v5 = vadd.f32 %v351_v1, %v1638_v15  ;;  %v396_v6 = vadd.f32 %v395_v2, %v1640_v16 }
  0xd3   :  { %424 = vst [vmem:[#allocation2 + $0x10] sm:$0xff] %v352_v5  ;;  %v266_v7 = vpop.f32.mrf.mxu0 }
  0xd4   :  { %425 = vst [vmem:[#allocation2 + $0x18] sm:$0xff] %v396_v6  ;;  %v310_v8 = vpop.f32.mrf.mxu1  ;;  %v267_v9 = vadd.f32 %v266_v7, %v1634_v10 }
  0xd5   :  { %v311_v11 = vadd.f32 %v310_v8, %v1636_v12 }
  0xd6   :  { %426 = vst [vmem:[#allocation2 + $0x20] sm:$0xff] %v267_v9 }
  0xd7   :  { %427 = vst [vmem:[#allocation2 + $0x28] sm:$0xff] %v311_v11 }
  0xd8   :  { %v354_v19 = vpop.f32.mrf.mxu2  ;;  %v398_v3 = vpop.f32.mrf.mxu3 }
  0xd9   :  { %v355_v4 = vadd.f32 %v354_v19, %v1638_v15  ;;  %v399_v13 = vadd.f32 %v398_v3, %v1640_v16 }
  0xdb   :  { %428 = vst [vmem:[#allocation2 + $0x30] sm:$0xff] %v355_v4  ;;  %v269_v1 = vpop.f32.mrf.mxu0 }
  0xdc   :  { %429 = vst [vmem:[#allocation2 + $0x38] sm:$0xff] %v399_v13  ;;  %v313_v14 = vpop.f32.mrf.mxu1  ;;  %v270_v2 = vadd.f32 %v269_v1, %v1634_v10 }
  0xdd   :  { %v314_v5 = vadd.f32 %v313_v14, %v1636_v12 }
  0xde   :  { %430 = vst [vmem:[#allocation2 + $0x40] sm:$0xff] %v270_v2 }
  0xdf   :  { %431 = vst [vmem:[#allocation2 + $0x48] sm:$0xff] %v314_v5 }
  0xe0   :  { %v357_v6 = vpop.f32.mrf.mxu2  ;;  %v401_v7 = vpop.f32.mrf.mxu3 }
  0xe1   :  { %v358_v8 = vadd.f32 %v357_v6, %v1638_v15  ;;  %v402_v9 = vadd.f32 %v401_v7, %v1640_v16 }
  0xe3   :  { %432 = vst [vmem:[#allocation2 + $0x50] sm:$0xff] %v358_v8  ;;  %v272_v19 = vpop.f32.mrf.mxu0 }
  0xe4   :  { %433 = vst [vmem:[#allocation2 + $0x58] sm:$0xff] %v402_v9  ;;  %v316_v11 = vpop.f32.mrf.mxu1  ;;  %v273_v3 = vadd.f32 %v272_v19, %v1634_v10 }
  0xe5   :  { %v317_v4 = vadd.f32 %v316_v11, %v1636_v12 }
  0xe6   :  { %434 = vst [vmem:[#allocation2 + $0x60] sm:$0xff] %v273_v3 }
  0xe7   :  { %435 = vst [vmem:[#allocation2 + $0x68] sm:$0xff] %v317_v4 }
  0xe8   :  { %v360_v13 = vpop.f32.mrf.mxu2  ;;  %v404_v1 = vpop.f32.mrf.mxu3 }
  0xe9   :  { %v361_v14 = vadd.f32 %v360_v13, %v1638_v15  ;;  %v405_v2 = vadd.f32 %v404_v1, %v1640_v16 }
  0xeb   :  { %436 = vst [vmem:[#allocation2 + $0x70] sm:$0xff] %v361_v14  ;;  %v275_v6 = vpop.f32.mrf.mxu0 }
  0xec   :  { %437 = vst [vmem:[#allocation2 + $0x78] sm:$0xff] %v405_v2  ;;  %v319_v5 = vpop.f32.mrf.mxu1  ;;  %v276_v7 = vadd.f32 %v275_v6, %v1634_v10 }
  0xed   :  { %v320_v8 = vadd.f32 %v319_v5, %v1636_v12 }
  0xee   :  { %438 = vst [vmem:[#allocation2 + $0x80] sm:$0xff] %v276_v7 }
  0xef   :  { %439 = vst [vmem:[#allocation2 + $0x88] sm:$0xff] %v320_v8 }
  0xf0   :  { %v363_v9 = vpop.f32.mrf.mxu2  ;;  %v407_v19 = vpop.f32.mrf.mxu3 }
  0xf1   :  { %v364_v11 = vadd.f32 %v363_v9, %v1638_v15  ;;  %v408_v3 = vadd.f32 %v407_v19, %v1640_v16 }
  0xf3   :  { %440 = vst [vmem:[#allocation2 + $0x90] sm:$0xff] %v364_v11  ;;  %v278_v13 = vpop.f32.mrf.mxu0 }
  0xf4   :  { %441 = vst [vmem:[#allocation2 + $0x98] sm:$0xff] %v408_v3  ;;  %v322_v4 = vpop.f32.mrf.mxu1  ;;  %v279_v1 = vadd.f32 %v278_v13, %v1634_v10 }
  0xf5   :  { %v323_v14 = vadd.f32 %v322_v4, %v1636_v12 }
  0xf6   :  { %442 = vst [vmem:[#allocation2 + $0xa0] sm:$0xff] %v279_v1 }
  0xf7   :  { %443 = vst [vmem:[#allocation2 + $0xa8] sm:$0xff] %v323_v14 }
  0xf8   :  { %v366_v2 = vpop.f32.mrf.mxu2  ;;  %v410_v6 = vpop.f32.mrf.mxu3 }
  0xf9   :  { %v367_v5 = vadd.f32 %v366_v2, %v1638_v15  ;;  %v411_v7 = vadd.f32 %v410_v6, %v1640_v16 }
  0xfb   :  { %444 = vst [vmem:[#allocation2 + $0xb0] sm:$0xff] %v367_v5  ;;  %v281_v9 = vpop.f32.mrf.mxu0 }
  0xfc   :  { %445 = vst [vmem:[#allocation2 + $0xb8] sm:$0xff] %v411_v7  ;;  %v325_v8 = vpop.f32.mrf.mxu1  ;;  %v282_v19 = vadd.f32 %v281_v9, %v1634_v10 }
  0xfd   :  { %v326_v11 = vadd.f32 %v325_v8, %v1636_v12 }
  0xfe   :  { %446 = vst [vmem:[#allocation2 + $0xc0] sm:$0xff] %v282_v19 }
  0xff   :  { %447 = vst [vmem:[#allocation2 + $0xc8] sm:$0xff] %v326_v11 }
 0x100   :  { %v369_v3 = vpop.f32.mrf.mxu2  ;;  %v413_v13 = vpop.f32.mrf.mxu3 }
 0x101   :  { %v370_v4 = vadd.f32 %v369_v3, %v1638_v15  ;;  %v414_v1 = vadd.f32 %v413_v13, %v1640_v16 }
 0x103   :  { %448 = vst [vmem:[#allocation2 + $0xd0] sm:$0xff] %v370_v4  ;;  %v284_v2 = vpop.f32.mrf.mxu0 }
 0x104   :  { %449 = vst [vmem:[#allocation2 + $0xd8] sm:$0xff] %v414_v1  ;;  %v328_v14 = vpop.f32.mrf.mxu1  ;;  %v285_v6 = vadd.f32 %v284_v2, %v1634_v10 }
 0x105   :  { %v329_v5 = vadd.f32 %v328_v14, %v1636_v12 }
 0x106   :  { %450 = vst [vmem:[#allocation2 + $0xe0] sm:$0xff] %v285_v6 }
 0x107   :  { %451 = vst [vmem:[#allocation2 + $0xe8] sm:$0xff] %v329_v5 }
 0x108   :  { %v372_v7 = vpop.f32.mrf.mxu2  ;;  %v416_v9 = vpop.f32.mrf.mxu3 }
 0x109   :  { %v373_v8 = vadd.f32 %v372_v7, %v1638_v15  ;;  %v417_v19 = vadd.f32 %v416_v9, %v1640_v16 }
 0x10b   :  { %452 = vst [vmem:[#allocation2 + $0xf0] sm:$0xff] %v373_v8  ;;  %v287_v3 = vpop.f32.mrf.mxu0 }
 0x10c   :  { %453 = vst [vmem:[#allocation2 + $0xf8] sm:$0xff] %v417_v19  ;;  %v331_v11 = vpop.f32.mrf.mxu1  ;;  %v288_v13 = vadd.f32 %v287_v3, %v1634_v10 }
 0x10d   :  { %v332_v4 = vadd.f32 %v331_v11, %v1636_v12 }
 0x10e   :  { %454 = vst [vmem:[#allocation2 + $0x100] sm:$0xff] %v288_v13 }
 0x10f   :  { %455 = vst [vmem:[#allocation2 + $0x108] sm:$0xff] %v332_v4 }
 0x110   :  { %v375_v1 = vpop.f32.mrf.mxu2  ;;  %v419_v2 = vpop.f32.mrf.mxu3 }
 0x111   :  { %v376_v14 = vadd.f32 %v375_v1, %v1638_v15  ;;  %v420_v6 = vadd.f32 %v419_v2, %v1640_v16 }
 0x113   :  { %456 = vst [vmem:[#allocation2 + $0x110] sm:$0xff] %v376_v14 }
 0x114   :  { %457 = vst [vmem:[#allocation2 + $0x118] sm:$0xff] %v420_v6 }
 0x115 LB: > { %477 = vmatpush.msra.mxu0 %v1626_v61  ;;  %497 = vmatpush.msra.mxu1 %v1628_v62  ;;  %v2047_v0 = vld [vmem:[#allocation45_spill] sm:$0xff]  ;;  %v2048_v25 = vld [vmem:[#allocation43_spill] sm:$0xff]  ;;  %v2049_v26 = vld [vmem:[#allocation44_spill] sm:$0xff]  ;;  %s1200_s20 = sshll.u32 %s1437_s4, 3  ;;  %s465_s4 = sadd.s32 1, %s1437_s4   ;;  %s1437_s4 = sphi %s1678_s4, %s465_s4  }
 0x116   : > { %537 = vmatpush.msra.mxu3 %v2047_v0  ;;  %517 = vmatpush.msra.mxu2 %v1630_v63  ;;  %v2050_v21 = vld [vmem:[#allocation39_spill] sm:$0xff]  ;;  %v2051_v22 = vld [vmem:[#allocation40_spill] sm:$0xff]  ;;  %v2052_v24 = vld [vmem:[#allocation42_spill] sm:$0xff]  ;;  %s467_s21 = sshra.s32 %s1200_s20, 3  ;;  %s627_s24 = scalar_lea.vmem [#allocation14], %s1200_s20 }
 0x117   : > { %478 = vmatpush.msra.mxu0 %v1618_v57  ;;  %498 = vmatpush.msra.mxu1 %v1620_v58  ;;  %v2053_v23 = vld [vmem:[#allocation41_spill] sm:$0xff]  ;;  %v2054_v17 = vld [vmem:[#allocation35_spill] sm:$0xff]  ;;  %v2055_v18 = vld [vmem:[#allocation36_spill] sm:$0xff]  ;;  %s1212_s22 = sshll.u32 %s467_s21, 5  ;;  %p462_p0 = scmp.ge.s32.totalorder %s465_s4, 9  }
 0x118   : > { %538 = vmatpush.msra.mxu3 %v1624_v60  ;;  %518 = vmatpush.msra.mxu2 %v1622_v59  ;;  %v2056_v20 = vld [vmem:[#allocation38_spill] sm:$0xff]  ;;  %v2057_v10 = vld [vmem:[#allocation37_spill] sm:$0xff]  ;;  %v2058_v12 = vld [vmem:[#allocation31_spill] sm:$0xff]  ;;  %s471_s23 = scalar_lea.vmem [#allocation2], %s1212_s22  ;;  %s1929_s25 = smov (%p462_p0), 0  }
 0x119   : > { %479 = vmatpush.msra.mxu0 %v1610_v53  ;;  %499 = vmatpush.msra.mxu1 %v1612_v54  ;;  %v2059_v15 = vld [vmem:[#allocation32_spill] sm:$0xff]  ;;  %v2060_v16 = vld [vmem:[#allocation34_spill] sm:$0xff]  ;;  %v2061_v5 = vld [vmem:[#allocation33_spill] sm:$0xff] }
 0x11a   : > { %539 = vmatpush.msra.mxu3 %v1616_v56  ;;  %519 = vmatpush.msra.mxu2 %v1614_v55  ;;  %v2062_v7 = vld [vmem:[#allocation27_spill] sm:$0xff]  ;;  %v2063_v9 = vld [vmem:[#allocation28_spill] sm:$0xff]  ;;  %v2064_v8 = vld [vmem:[#allocation30_spill] sm:$0xff] }
 0x11b   : > { %480 = vmatpush.msra.mxu0 %v1602_v49  ;;  %500 = vmatpush.msra.mxu1 %v1604_v50  ;;  %v2065_v19 = vld [vmem:[#allocation29_spill] sm:$0xff]  ;;  %v2066_v3 = vld [vmem:[#allocation23_spill] sm:$0xff]  ;;  %v2067_v11 = vld [vmem:[#allocation24_spill] sm:$0xff] }
 0x11c   : > { %540 = vmatpush.msra.mxu3 %v1608_v52  ;;  %520 = vmatpush.msra.mxu2 %v1606_v51  ;;  %v476_v13 = vld [vmem:[#allocation3] sm:$0xff]  ;;  %v2069_v1 = vld [vmem:[#allocation25_spill] sm:$0xff]  ;;  %v2070_v2 = vld [vmem:[#allocation19_spill] sm:$0xff] }
 0x11d   : > { %481 = vmatpush.msra.mxu0 %v1594_v45  ;;  %501 = vmatpush.msra.mxu1 %v1596_v46  ;;  %v2068_v4 = vld [vmem:[#allocation26_spill] sm:$0xff]  ;;  %v2071_v14 = vld [vmem:[#allocation20_spill] sm:$0xff]  ;;  %v1801_v46 = vld [vmem:[#allocation11 + $0x2b0] sm:$0xff] (%p462_p0) }
 0x11e   : > { %541 = vmatpush.msra.mxu3 %v1600_v48  ;;  %521 = vmatpush.msra.mxu2 %v1598_v47  ;;  %v2072_v6 = vld [vmem:[#allocation22_spill] sm:$0xff]  ;;  %v1803_v47 = vld [vmem:[#allocation11 + $0x2b8] sm:$0xff] (%p462_p0)  ;;  %v1805_v48 = vld [vmem:[#allocation11 + $0x2c0] sm:$0xff] (%p462_p0) }
 0x11f   : > { %482 = vmatpush.msra.mxu0 %v1586_v41  ;;  %502 = vmatpush.msra.mxu1 %v1588_v42  ;;  %v1791_v41 = vld [vmem:[#allocation11 + $0x288] sm:$0xff] (%p462_p0)  ;;  %v1793_v42 = vld [vmem:[#allocation11 + $0x290] sm:$0xff] (%p462_p0)  ;;  %v1811_v51 = vld [vmem:[#allocation11 + $0x2d8] sm:$0xff] (%p462_p0) }
 0x120   : > { %542 = vmatpush.msra.mxu3 %v1592_v44  ;;  %522 = vmatpush.msra.mxu2 %v1590_v43  ;;  %2091 = vst [vmem:[#allocation35_spill] sm:$0xff] (%p462_p0), %v1793_v42  ;;  %v1795_v43 = vld [vmem:[#allocation11 + $0x298] sm:$0xff] (%p462_p0)  ;;  %v1797_v44 = vld [vmem:[#allocation11 + $0x2a0] sm:$0xff] (%p462_p0)  ;;  %v1799_v45 = vld [vmem:[#allocation11 + $0x2a8] sm:$0xff] (%p462_p0) }
 0x121   : > { %483 = vmatpush.msra.mxu0 %v1578_v37  ;;  %503 = vmatpush.msra.mxu1 %v1580_v38  ;;  %v1783_v37 = vld [vmem:[#allocation11 + $0x268] sm:$0xff] (%p462_p0)  ;;  %v1785_v38 = vld [vmem:[#allocation11 + $0x270] sm:$0xff] (%p462_p0)  ;;  %2092 = vst [vmem:[#allocation36_spill] sm:$0xff] (%p462_p0), %v1795_v43  ;;  %v1813_v52 = vld [vmem:[#allocation11 + $0x2e0] sm:$0xff] (%p462_p0) }
 0x122   : > { %543 = vmatpush.msra.mxu3 %v1584_v40  ;;  %523 = vmatpush.msra.mxu2 %v1582_v39  ;;  %2088 = vst [vmem:[#allocation32_spill] sm:$0xff] (%p462_p0), %v1783_v37  ;;  %v1787_v39 = vld [vmem:[#allocation11 + $0x278] sm:$0xff] (%p462_p0)  ;;  %v1789_v40 = vld [vmem:[#allocation11 + $0x280] sm:$0xff] (%p462_p0)  ;;  %v1807_v49 = vld [vmem:[#allocation11 + $0x2c8] sm:$0xff] (%p462_p0) }
 0x123   : > { %484 = vmatpush.msra.mxu0 %v1570_v33  ;;  %504 = vmatpush.msra.mxu1 %v1572_v34  ;;  %v1775_v33 = vld [vmem:[#allocation11 + $0x248] sm:$0xff] (%p462_p0)  ;;  %v1777_v34 = vld [vmem:[#allocation11 + $0x250] sm:$0xff] (%p462_p0)  ;;  %2089 = vst [vmem:[#allocation33_spill] sm:$0xff] (%p462_p0), %v1785_v38  ;;  %v1819_v55 = vld [vmem:[#allocation11 + $0x2f8] sm:$0xff] (%p462_p0) }
 0x124   : > { %544 = vmatpush.msra.mxu3 %v1576_v36  ;;  %524 = vmatpush.msra.mxu2 %v1574_v35  ;;  %2084 = vst [vmem:[#allocation28_spill] sm:$0xff] (%p462_p0), %v1775_v33  ;;  %v1779_v35 = vld [vmem:[#allocation11 + $0x258] sm:$0xff] (%p462_p0)  ;;  %v1781_v36 = vld [vmem:[#allocation11 + $0x260] sm:$0xff] (%p462_p0)  ;;  %v1809_v50 = vld [vmem:[#allocation11 + $0x2d0] sm:$0xff] (%p462_p0) }
 0x125   : > { %485 = vmatpush.msra.mxu0 %v1562_v29  ;;  %505 = vmatpush.msra.mxu1 %v1564_v30  ;;  %v1767_v29 = vld [vmem:[#allocation11 + $0x228] sm:$0xff] (%p462_p0)  ;;  %v1769_v30 = vld [vmem:[#allocation11 + $0x230] sm:$0xff] (%p462_p0)  ;;  %2085 = vst [vmem:[#allocation29_spill] sm:$0xff] (%p462_p0), %v1777_v34  ;;  %v1821_v56 = vld [vmem:[#allocation11 + $0x300] sm:$0xff] (%p462_p0) }
 0x126   : > { %545 = vmatpush.msra.mxu3 %v1568_v32  ;;  %525 = vmatpush.msra.mxu2 %v1566_v31  ;;  %2080 = vst [vmem:[#allocation24_spill] sm:$0xff] (%p462_p0), %v1767_v29  ;;  %v1771_v31 = vld [vmem:[#allocation11 + $0x238] sm:$0xff] (%p462_p0)  ;;  %v1773_v32 = vld [vmem:[#allocation11 + $0x240] sm:$0xff] (%p462_p0)  ;;  %v1815_v53 = vld [vmem:[#allocation11 + $0x2e8] sm:$0xff] (%p462_p0) }
 0x127   : > { %486 = vmatpush.msra.mxu0 %v2048_v25  ;;  %506 = vmatpush.msra.mxu1 %v2049_v26  ;;  %2081 = vst [vmem:[#allocation25_spill] sm:$0xff] (%p462_p0), %v1769_v30  ;;  %v1817_v54 = vld [vmem:[#allocation11 + $0x2f0] sm:$0xff] (%p462_p0)  ;;  %v1823_v57 = vld [vmem:[#allocation11 + $0x308] sm:$0xff] (%p462_p0)  ;;  %v1827_v59 = vld [vmem:[#allocation11 + $0x318] sm:$0xff] (%p462_p0) }
 0x128   : > { %546 = vmatpush.msra.mxu3 %v1560_v28  ;;  %526 = vmatpush.msra.mxu2 %v1558_v27  ;;  %v1763_v27 = vld [vmem:[#allocation11 + $0x218] sm:$0xff] (%p462_p0)  ;;  %v1765_v28 = vld [vmem:[#allocation11 + $0x220] sm:$0xff] (%p462_p0)  ;;  %2082 = vst [vmem:[#allocation26_spill] sm:$0xff] (%p462_p0), %v1771_v31  ;;  %v1825_v58 = vld [vmem:[#allocation11 + $0x310] sm:$0xff] (%p462_p0) }
 0x129   : > { %487 = vmatpush.msra.mxu0 %v2050_v21  ;;  %507 = vmatpush.msra.mxu1 %v2051_v22  ;;  %2078 = vst [vmem:[#allocation22_spill] sm:$0xff] (%p462_p0), %v1763_v27  ;;  %v1829_v60 = vld [vmem:[#allocation11 + $0x320] sm:$0xff] (%p462_p0)  ;;  %v1831_v61 = vld [vmem:[#allocation11 + $0x328] sm:$0xff] (%p462_p0)  ;;  %v1833_v62 = vld [vmem:[#allocation11 + $0x330] sm:$0xff] (%p462_p0) }
 0x12a   : > { %547 = vmatpush.msra.mxu3 %v2052_v24  ;;  %527 = vmatpush.msra.mxu2 %v2053_v23  ;;  %2079 = vst [vmem:[#allocation23_spill] sm:$0xff] (%p462_p0), %v1765_v28  ;;  %v1835_v63 = vld [vmem:[#allocation11 + $0x338] sm:$0xff] (%p462_p0)  ;;  %v688_v27 = vld [vmem:[#allocation10 + $0x190] sm:$0xff] (%p462_p0)  ;;  %v695_v30 = vld [vmem:[#allocation10 + $0x1c8] sm:$0xff] (%p462_p0) }
 0x12b   : > { %488 = vmatpush.msra.mxu0 %v2054_v17  ;;  %508 = vmatpush.msra.mxu1 %v2055_v18  ;;  %2083 = vst [vmem:[#allocation27_spill] sm:$0xff] (%p462_p0), %v1773_v32  ;;  %v684_v31 = vld [vmem:[#allocation10 + $0x170] sm:$0xff] (%p462_p0)  ;;  %v685_v29 = vld [vmem:[#allocation10 + $0x178] sm:$0xff] (%p462_p0)  ;;  %v690_v28 = vld [vmem:[#allocation10 + $0x1a0] sm:$0xff] (%p462_p0) }
 0x12c   : > { %548 = vmatpush.msra.mxu3 %v2056_v20  ;;  %528 = vmatpush.msra.mxu2 %v2057_v10  ;;  %v2073_v10 = vld [vmem:[#allocation21_spill] sm:$0xff]  ;;  %2086 = vst [vmem:[#allocation30_spill] sm:$0xff] (%p462_p0), %v1779_v35  ;;  %v691_v34 = vld [vmem:[#allocation10 + $0x1a8] sm:$0xff] (%p462_p0)  ;;  %v680_v35 = vld [vmem:[#allocation10 + $0x150] sm:$0xff] (%p462_p0) }
 0x12d   : > { %489 = vmatpush.msra.mxu0 %v2058_v12  ;;  %509 = vmatpush.msra.mxu1 %v2059_v15  ;;  %v472_v12 = vld [vmem:[%s471_s23] sm:$0xff]  ;;  %v473_v15 = vld [vmem:[%s471_s23 + $0x8] sm:$0xff]  ;;  %2087 = vst [vmem:[#allocation31_spill] sm:$0xff] (%p462_p0), %v1781_v36  ;;  %v681_v33 = vld [vmem:[#allocation10 + $0x158] sm:$0xff] (%p462_p0) }
 0x12e   : > { %549 = vmatpush.msra.mxu3 %v2060_v16  ;;  %529 = vmatpush.msra.mxu2 %v2061_v5  ;;  %2090 = vst [vmem:[#allocation34_spill] sm:$0xff] (%p462_p0), %v1787_v39  ;;  %v686_v32 = vld [vmem:[#allocation10 + $0x180] sm:$0xff] (%p462_p0)  ;;  %v687_v38 = vld [vmem:[#allocation10 + $0x188] sm:$0xff] (%p462_p0)  ;;  %v677_v39 = vld [vmem:[#allocation10 + $0x138] sm:$0xff] (%p462_p0) }
 0x12f   : > { %490 = vmatpush.msra.mxu0 %v2062_v7  ;;  %510 = vmatpush.msra.mxu1 %v2063_v9  ;;  %v678_v37 = vld [vmem:[#allocation10 + $0x140] sm:$0xff] (%p462_p0)  ;;  %v669_v36 = vld [vmem:[#allocation10 + $0xf8] sm:$0xff] (%p462_p0) }
 0x130   : > { %550 = vmatpush.msra.mxu3 %v2064_v8  ;;  %530 = vmatpush.msra.mxu2 %v2065_v19 }
 0x131   : > { %491 = vmatpush.msra.mxu0 %v2066_v3  ;;  %511 = vmatpush.msra.mxu1 %v2067_v11  ;;  %v475_v3 = vld [vmem:[%s471_s23 + $0x18] sm:$0xff] }
 0x132   : > { %551 = vmatpush.msra.mxu3 %v2068_v4  ;;  %531 = vmatpush.msra.mxu2 %v2069_v1 }
 0x133   : > { %492 = vmatpush.msra.mxu0 %v2070_v2  ;;  %512 = vmatpush.msra.mxu1 %v2071_v14 }
 0x134   : > { %552 = vmatpush.msra.mxu3 %v2072_v6  ;;  %493 = vmatmul.f32.vlgmr.msra.gmra.mxu0 %v476_v13 }
 0x135   : > { %513 = vmatmul.f32.vlgmr.msra.gmra.mxu1 %v476_v13  ;;  %553 = vmatmul.f32.vlgmr.msra.gmra.mxu3 %v476_v13 }
 0x136   : > { %532 = vmatpush.msra.mxu2 %v2073_v10  ;;  %v474_v10 = vld [vmem:[%s471_s23 + $0x10] sm:$0xff] }
 0x137   : > { %533 = vmatmul.f32.vlgmr.msra.gmra.mxu2 %v476_v13 }
 0x1b1   : > { %v494_v16 = vpop.f32.mrf.mxu0 }
 0x1b2   : > { %v557_v5 = vadd.f32 %v494_v16, %v472_v12  ;;  %v514_v7 = vpop.f32.mrf.mxu1 }
 0x1b3   : > { %v558_v9 = vadd.f32 %v514_v7, %v473_v15 }
 0x1b4   : > { %v1203_v8 = vmul.f32 -1.442695, %v557_v5 }
 0x1b5   : > { %v1204_v19 = vmul.f32 -1.442695, %v558_v9 }
 0x1b6   : > { %1243 = vpow2.f32 %v1203_v8 }
 0x1b7   : > { %1245 = vpow2.f32 %v1204_v19 }
 0x1b8   : > { %v554_v11 = vpop.f32.mrf.mxu3 }
 0x1b9   : > { %v560_v4 = vadd.f32 %v554_v11, %v475_v3 }
 0x1ba   : > { %v534_v0 = vpop.f32.mrf.mxu2 }
 0x1bb   : > { %v1205_v1 = vmul.f32 -1.442695, %v560_v4  ;;  %v559_v16 = vadd.f32 %v534_v0, %v474_v10 }
 0x1bc   : > { %v1244_v13 = vpop.eup %1243 }
 0x1bd   : > { %v1246_v2 = vpop.eup %1245  ;;  %v564_v14 = vadd.f32 1.0, %v1244_v13  ;;  %1247 = vpow2.f32 %v1205_v1 }
 0x1be   : > { %v583_v6 = vadd.f32 1.0, %v1246_v2 }
 0x1bf   : > { %1249 = vrcp.f32 %v564_v14  ;;  %v576_v11 = vand.u32 2147483648, %v564_v14  ;;  %v574_v1 = vand.u32 2147483647, %v564_v14  ;;  %vm570_vm2 = vweird.f32 %v564_v14 }
 0x1c0   : > { %1251 = vrcp.f32 %v583_v6  ;;  %v595_v4 = vand.u32 2147483648, %v583_v6  ;;  %v593_v17 = vand.u32 2147483647, %v583_v6  ;;  %vm589_vm3 = vweird.f32 %v583_v6 }
 0x1c1   : > { %vm575_vm6 = vcmp.eq.f32.partialorder %v574_v1, 8.507059e+37  ;;  %v1757_v1 = vld [vmem:[#allocation11 + $0x200] sm:$0xff] (%p462_p0) }
 0x1c2   : > { %vm594_vm7 = vcmp.eq.f32.partialorder %v593_v17, 8.507059e+37  ;;  %2075 = vst [vmem:[#allocation19_spill] sm:$0xff] (%p462_p0), %v1757_v1  ;;  %v694_v1 = vld [vmem:[#allocation10 + $0x1c0] sm:$0xff] (%p462_p0) }
 0x1c3   : > { %v1248_v12 = vpop.eup %1247 }
 0x1c4   : > { %v603_v15 = vadd.f32 1.0, %v1248_v12  ;;  %v577_v12 = vor.u32 1.1754944e-38, %v576_v11 }
 0x1c5   : > { %v1250_v5 = vpop.eup %1249 }
 0x1c6   : > { %v1252_v7 = vpop.eup %1251  ;;  %v566_v9 = vmul.f32 %v1250_v5, %v564_v14  ;;  %1253 = vrcp.f32 %v603_v15  ;;  %vm571_vm0 = vweird.f32 %v1250_v5  ;;  %v615_v26 = vand.u32 2147483648, %v603_v15 }
 0x1c7   : > { %v585_v8 = vmul.f32 %v1252_v7, %v583_v6  ;;  %1255 = vtanh.f32 %v559_v16  ;;  %vm590_vm1 = vweird.f32 %v1252_v7  ;;  %vm572_vm4 = vmor %vm570_vm2, %vm571_vm0  ;;  %v596_v16 = vor.u32 1.1754944e-38, %v595_v4 }
 0x1c8   : > { %v567_v19 = vsub.f32 1.0, %v566_v9  ;;  %vm591_vm5 = vmor %vm589_vm3, %vm590_vm1  ;;  %vm609_vm9 = vweird.f32 %v603_v15  ;;  %v613_v11 = vand.u32 2147483647, %v603_v15 }
 0x1c9   : > { %v586_v3 = vsub.f32 1.0, %v585_v8  ;;  %v619_v8 = vld [vmem:[#allocation4] sm:$0xff] }
 0x1ca   : > { %v568_v13 = vmul.f32 %v1250_v5, %v567_v19  ;;  %vm614_vm11 = vcmp.eq.f32.partialorder %v613_v11, 8.507059e+37  ;;  %v1857_v11 = vld [vmem:[#allocation11 + $0x390] sm:$0xff] (%p462_p0) }
 0x1cb   : > { %v587_v2 = vmul.f32 %v1252_v7, %v586_v3  ;;  %2098 = vst [vmem:[#allocation42_spill] sm:$0xff] (%p462_p0), %v1857_v11 }
 0x1cc   : > { %v1254_v18 = vpop.eup %1253  ;;  %v569_v20 = vadd.f32 %v1250_v5, %v568_v13 }
 0x1cd   : > { %v1256_v0 = vpop.eup %1255  ;;  %v605_v10 = vmul.f32 %v1254_v18, %v603_v15  ;;  %v588_v21 = vadd.f32 %v1252_v7, %v587_v2  ;;  %vm610_vm8 = vweird.f32 %v1254_v18  ;;  %v693_v15 = vld [vmem:[#allocation10 + $0x1b8] sm:$0xff] (%p462_p0)  ;;  %v1759_v2 = vld [vmem:[#allocation11 + $0x208] sm:$0xff] (%p462_p0) }
 0x1ce   : > { %v573_v9 = vsel %vm572_vm4, %v1250_v5, %v569_v20  ;;  %vm611_vm10 = vmor %vm609_vm9, %vm610_vm8  ;;  %v616_v5 = vor.u32 1.1754944e-38, %v615_v26  ;;  %v692_v26 = vld [vmem:[#allocation10 + $0x1b0] sm:$0xff] (%p462_p0)  ;;  %2076 = vst [vmem:[#allocation20_spill] sm:$0xff] (%p462_p0), %v1759_v2  ;;  %v689_v2 = vld [vmem:[#allocation10 + $0x198] sm:$0xff] (%p462_p0) }
 0x1cf   : > { %v606_v19 = vsub.f32 1.0, %v605_v10  ;;  %v578_v22 = vsel %vm575_vm6, %v577_v12, %v573_v9  ;;  %v592_v23 = vsel %vm591_vm5, %v1252_v7, %v588_v21  ;;  %v698_v7 = vld [vmem:[#allocation10 + $0x1e0] sm:$0xff] (%p462_p0)  ;;  %v1839_v12 = vld [vmem:[#allocation11 + $0x348] sm:$0xff] (%p462_p0)  ;;  %v1843_v9 = vld [vmem:[#allocation11 + $0x358] sm:$0xff] (%p462_p0) }
 0x1d0   : > { %v597_v3 = vsel %vm594_vm7, %v596_v16, %v592_v23  ;;  %v621_v24 = vmul.f32 %v1256_v0, %v578_v22  ;;  %v700_v22 = vld [vmem:[#allocation10 + $0x1f0] sm:$0xff] (%p462_p0)  ;;  %v701_v23 = vld [vmem:[#allocation10 + $0x1f8] sm:$0xff] (%p462_p0)  ;;  %778 = vmatpush.msra.mxu0 (%p462_p0), %v698_v7  ;;  %v1837_v10 = vld [vmem:[#allocation11 + $0x340] sm:$0xff] (%p462_p0)  ;;  %2094 = vst [vmem:[#allocation38_spill] sm:$0xff] (%p462_p0), %v1843_v9 }
 0x1d1   : > { %v607_v25 = vmul.f32 %v1254_v18, %v606_v19  ;;  %v620_v13 = vmul.f32 %v619_v8, %v597_v3  ;;  %866 = vmatpush.msra.mxu2 (%p462_p0), %v700_v22  ;;  %910 = vmatpush.msra.mxu3 (%p462_p0), %v701_v23  ;;  %v1761_v0 = vld [vmem:[#allocation11 + $0x210] sm:$0xff] (%p462_p0)  ;;  %2093 = vst [vmem:[#allocation37_spill] sm:$0xff] (%p462_p0), %v1837_v10  ;;  %v1845_v8 = vld [vmem:[#allocation11 + $0x360] sm:$0xff] (%p462_p0)  ;;  %v1847_v19 = vld [vmem:[#allocation11 + $0x368] sm:$0xff] (%p462_p0) }
 0x1d2   :  { %2077 = vst [vmem:[#allocation21_spill] sm:$0xff] (%p462_p0), %v1761_v0  ;;  %v1841_v16 = vld [vmem:[#allocation11 + $0x350] sm:$0xff] (%p462_p0)  ;;  %v1869_v22 = vld [vmem:[#allocation11 + $0x3c0] sm:$0xff] (%p462_p0)  ;;  %v1871_v23 = vld [vmem:[#allocation11 + $0x3c8] sm:$0xff] (%p462_p0)  ;;  %779 = vmatpush.msra.mxu0 (%p462_p0), %v694_v1 }
 0x1d3   : > { %v622_v14 = vadd.f32 %v621_v24, %v620_v13  ;;  %v608_v6 = vadd.f32 %v1254_v18, %v607_v25  ;;  %v696_v24 = vld [vmem:[#allocation10 + $0x1d0] sm:$0xff] (%p462_p0)  ;;  %v2074_v25 = vmov (%p462_p0), 0.0   ;;  %2095 = vst [vmem:[#allocation39_spill] sm:$0xff] (%p462_p0), %v1845_v8  ;;  %v1851_v13 = vld [vmem:[#allocation11 + $0x378] sm:$0xff] (%p462_p0)  ;;  %v699_v0 = vld [vmem:[#allocation10 + $0x1e8] sm:$0xff] (%p462_p0) }
 0x1d4   :  { %867 = vmatpush.msra.mxu2 (%p462_p0), %v696_v24  ;;  %v1849_v3 = vld [vmem:[#allocation11 + $0x370] sm:$0xff] (%p462_p0)  ;;  %v1883_v7 = vld [vmem:[#allocation11 + $0x3f8] sm:$0xff] (%p462_p0)  ;;  %822 = vmatpush.msra.mxu1 (%p462_p0), %v699_v0 }
 0x1d5   : > { %1257 = vtanh.f32 %v622_v14  ;;  %625 = vst [vmem:[#allocation4] sm:$0xff] %v622_v14  ;;  %v612_v20 = vsel %vm611_vm10, %v1254_v18, %v608_v6  ;;  %v697_v18 = vld [vmem:[#allocation10 + $0x1d8] sm:$0xff] (%p462_p0)  ;;  %v1853_v14 = vld [vmem:[#allocation11 + $0x380] sm:$0xff] (%p462_p0)  ;;  %v1855_v6 = vld [vmem:[#allocation11 + $0x388] sm:$0xff] (%p462_p0)  ;;  %780 = vmatpush.msra.mxu0 (%p462_p0), %v690_v28 }
 0x1d6   : > { %v617_v21 = vsel %vm614_vm11, %v616_v5, %v612_v20  ;;  %991 = vst [vmem:[#allocation4] sm:$0xff] (%p462_p0), %v2074_v25  ;;  %911 = vmatpush.msra.mxu3 (%p462_p0), %v697_v18  ;;  %868 = vmatpush.msra.mxu2 (%p462_p0), %v692_v26  ;;  %v1859_v20 = vld [vmem:[#allocation11 + $0x398] sm:$0xff] (%p462_p0)  ;;  %v1861_v5 = vld [vmem:[#allocation11 + $0x3a0] sm:$0xff] (%p462_p0)  ;;  %v1873_v24 = vld [vmem:[#allocation11 + $0x3d0] sm:$0xff] (%p462_p0) }
 0x1d7   :  { %2096 = vst [vmem:[#allocation40_spill] sm:$0xff] (%p462_p0), %v1849_v3  ;;  %v1877_v18 = vld [vmem:[#allocation11 + $0x3e0] sm:$0xff] (%p462_p0)  ;;  %v1879_v26 = vld [vmem:[#allocation11 + $0x3e8] sm:$0xff] (%p462_p0)  ;;  %823 = vmatpush.msra.mxu1 (%p462_p0), %v695_v30  ;;  %v676_v0 = vld [vmem:[#allocation10 + $0x130] sm:$0xff] (%p462_p0)  ;;  %781 = vmatpush.msra.mxu0 (%p462_p0), %v686_v32 }
 0x1d8   :  { %912 = vmatpush.msra.mxu3 (%p462_p0), %v693_v15  ;;  %2097 = vst [vmem:[#allocation41_spill] sm:$0xff] (%p462_p0), %v1855_v6  ;;  %v1881_v15 = vld [vmem:[#allocation11 + $0x3f0] sm:$0xff] (%p462_p0)  ;;  %869 = vmatpush.msra.mxu2 (%p462_p0), %v688_v27  ;;  %v683_v27 = vld [vmem:[#allocation10 + $0x168] sm:$0xff] (%p462_p0)  ;;  %v673_v30 = vld [vmem:[#allocation10 + $0x118] sm:$0xff] (%p462_p0) }
 0x1d9   :  { %2099 = vst [vmem:[#allocation43_spill] sm:$0xff] (%p462_p0), %v1861_v5  ;;  %824 = vmatpush.msra.mxu1 (%p462_p0), %v691_v34  ;;  %v672_v1 = vld [vmem:[#allocation10 + $0x110] sm:$0xff] (%p462_p0)  ;;  %v674_v28 = vld [vmem:[#allocation10 + $0x120] sm:$0xff] (%p462_p0)  ;;  %v675_v34 = vld [vmem:[#allocation10 + $0x128] sm:$0xff] (%p462_p0) }
 0x1da   :  { %2101 = vst [vmem:[#allocation45_spill] sm:$0xff] (%p462_p0), %v1883_v7  ;;  %913 = vmatpush.msra.mxu3 (%p462_p0), %v689_v2  ;;  %870 = vmatpush.msra.mxu2 (%p462_p0), %v684_v31  ;;  %v682_v2 = vld [vmem:[#allocation10 + $0x160] sm:$0xff] (%p462_p0)  ;;  %v679_v31 = vld [vmem:[#allocation10 + $0x148] sm:$0xff] (%p462_p0) }
 0x1db   : > { %v1258_v4 = vpop.eup %1257  ;;  %464 = sbr.rel (!%p462_p0) target bundleno = 277 (0x115), region = 80  ;;  %825 = vmatpush.msra.mxu1 (%p462_p0), %v687_v38  ;;  %782 = vmatpush.msra.mxu0 (%p462_p0), %v682_v2  ;;  %v670_v32 = vld [vmem:[#allocation10 + $0x100] sm:$0xff] (%p462_p0)  ;;  %v671_v38 = vld [vmem:[#allocation10 + $0x108] sm:$0xff] (%p462_p0) }
 0x1dc   : > { %v624_v17 = vmul.f32 %v1258_v4, %v617_v21  ;;  %v1863_v4 = vld [vmem:[#allocation11 + $0x3a8] sm:$0xff] (%p462_p0)  ;;  %v1865_v21 = vld [vmem:[#allocation11 + $0x3b0] sm:$0xff] (%p462_p0)  ;;  %914 = vmatpush.msra.mxu3 (%p462_p0), %v685_v29  ;;  %871 = vmatpush.msra.mxu2 (%p462_p0), %v680_v35  ;;  %v665_v35 = vld [vmem:[#allocation10 + $0xd8] sm:$0xff] (%p462_p0) }
 0x1dd   :  { %2100 = vst [vmem:[#allocation44_spill] sm:$0xff] (%p462_p0), %v1863_v4  ;;  %826 = vmatpush.msra.mxu1 (%p462_p0), %v683_v27  ;;  %v668_v29 = vld [vmem:[#allocation10 + $0xf0] sm:$0xff] (%p462_p0)  ;;  %783 = vmatpush.msra.mxu0 (%p462_p0), %v678_v37  ;;  %v666_v2 = vld [vmem:[#allocation10 + $0xe0] sm:$0xff] (%p462_p0)  ;;  %v667_v27 = vld [vmem:[#allocation10 + $0xe8] sm:$0xff] (%p462_p0) }
 0x1de   : > { %626 = vst [vmem:[#allocation3] sm:$0xff] %v624_v17  ;;  %915 = vmatpush.msra.mxu3 (%p462_p0), %v681_v33  ;;  %872 = vmatpush.msra.mxu2 (%p462_p0), %v676_v0  ;;  %v664_v33 = vld [vmem:[#allocation10 + $0xd0] sm:$0xff] (%p462_p0)  ;;  %v661_v0 = vld [vmem:[#allocation10 + $0xb8] sm:$0xff] (%p462_p0)  ;;  %v662_v37 = vld [vmem:[#allocation10 + $0xc0] sm:$0xff] (%p462_p0) }
 0x1df   : > { %628 = vst [vmem:[%s627_s24] sm:$0xff] %v624_v17  ;;  %v1867_v17 = vld [vmem:[#allocation11 + $0x3b8] sm:$0xff] (%p462_p0)  ;;  %827 = vmatpush.msra.mxu1 (%p462_p0), %v679_v31  ;;  %784 = vmatpush.msra.mxu0 (%p462_p0), %v674_v28  ;;  %v663_v31 = vld [vmem:[#allocation10 + $0xc8] sm:$0xff] (%p462_p0)  ;;  %v658_v28 = vld [vmem:[#allocation10 + $0xa0] sm:$0xff] (%p462_p0) }
 0x1e0   :  { %990 = vst [vmem:[#allocation3] sm:$0xff] %v2074_v25  ;;  %v1875_v25 = vld [vmem:[#allocation11 + $0x3d8] sm:$0xff]  ;;  %916 = vmatpush.msra.mxu3 %v677_v39  ;;  %873 = vmatpush.msra.mxu2 %v672_v1  ;;  %v660_v39 = vld [vmem:[#allocation10 + $0xb0] sm:$0xff] }
 0x1e1   :  { %828 = vmatpush.msra.mxu1 %v675_v34  ;;  %785 = vmatpush.msra.mxu0 %v670_v32  ;;  %v656_v1 = vld [vmem:[#allocation10 + $0x90] sm:$0xff]  ;;  %v659_v34 = vld [vmem:[#allocation10 + $0xa8] sm:$0xff]  ;;  %v654_v32 = vld [vmem:[#allocation10 + $0x80] sm:$0xff] }
 0x1e2   :  { %917 = vmatpush.msra.mxu3 %v673_v30  ;;  %874 = vmatpush.msra.mxu2 %v668_v29  ;;  %v657_v30 = vld [vmem:[#allocation10 + $0x98] sm:$0xff] }
 0x1e3   :  { %829 = vmatpush.msra.mxu1 %v671_v38  ;;  %786 = vmatpush.msra.mxu0 %v666_v2  ;;  %v653_v29 = vld [vmem:[#allocation10 + $0x78] sm:$0xff]  ;;  %v655_v38 = vld [vmem:[#allocation10 + $0x88] sm:$0xff]  ;;  %v650_v2 = vld [vmem:[#allocation10 + $0x60] sm:$0xff] }
 0x1e4   :  { %918 = vmatpush.msra.mxu3 %v669_v36  ;;  %875 = vmatpush.msra.mxu2 %v664_v33  ;;  %v652_v36 = vld [vmem:[#allocation10 + $0x70] sm:$0xff] }
 0x1e5   :  { %830 = vmatpush.msra.mxu1 %v667_v27  ;;  %787 = vmatpush.msra.mxu0 %v662_v37  ;;  %v648_v33 = vld [vmem:[#allocation10 + $0x50] sm:$0xff]  ;;  %v651_v27 = vld [vmem:[#allocation10 + $0x68] sm:$0xff] }
 0x1e6   :  { %919 = vmatpush.msra.mxu3 %v665_v35  ;;  %876 = vmatpush.msra.mxu2 %v660_v39  ;;  %v649_v35 = vld [vmem:[#allocation10 + $0x58] sm:$0xff]  ;;  %v644_v39 = vld [vmem:[#allocation10 + $0x30] sm:$0xff]  ;;  %v629_v37 = vld [vmem:[#allocation14] sm:$0xff] }
 0x1e7   :  { %831 = vmatpush.msra.mxu1 %v663_v31  ;;  %788 = vmatpush.msra.mxu0 %v658_v28  ;;  %v646_v31 = vld [vmem:[#allocation10 + $0x40] sm:$0xff]  ;;  %v643_v28 = vld [vmem:[#allocation10 + $0x28] sm:$0xff] }
 0x1e8   :  { %920 = vmatpush.msra.mxu3 %v661_v0  ;;  %877 = vmatpush.msra.mxu2 %v656_v1  ;;  %v645_v0 = vld [vmem:[#allocation10 + $0x38] sm:$0xff]  ;;  %v640_v1 = vld [vmem:[#allocation10 + $0x10] sm:$0xff] }
 0x1e9   :  { %832 = vmatpush.msra.mxu1 %v659_v34  ;;  %789 = vmatpush.msra.mxu0 %v654_v32  ;;  %v638_v34 = vld [vmem:[#allocation10] sm:$0xff]  ;;  %v631_v32 = vld [vmem:[#allocation14 + $0x10] sm:$0xff] }
 0x1ea   :  { %921 = vmatpush.msra.mxu3 %v657_v30  ;;  %878 = vmatpush.msra.mxu2 %v652_v36  ;;  %v641_v30 = vld [vmem:[#allocation10 + $0x18] sm:$0xff]  ;;  %v647_v36 = vld [vmem:[#allocation10 + $0x48] sm:$0xff] }
 0x1eb   :  { %833 = vmatpush.msra.mxu1 %v655_v38  ;;  %790 = vmatpush.msra.mxu0 %v650_v2  ;;  %v632_v38 = vld [vmem:[#allocation14 + $0x18] sm:$0xff]  ;;  %v635_v2 = vld [vmem:[#allocation14 + $0x30] sm:$0xff] }
 0x1ec   :  { %922 = vmatpush.msra.mxu3 %v653_v29  ;;  %879 = vmatpush.msra.mxu2 %v648_v33  ;;  %v642_v29 = vld [vmem:[#allocation10 + $0x20] sm:$0xff]  ;;  %v639_v33 = vld [vmem:[#allocation10 + $0x8] sm:$0xff] }
 0x1ed   :  { %834 = vmatpush.msra.mxu1 %v651_v27  ;;  %791 = vmatpush.msra.mxu0 %v646_v31  ;;  %v636_v27 = vld [vmem:[#allocation14 + $0x38] sm:$0xff] }
 0x1ee   :  { %923 = vmatpush.msra.mxu3 %v649_v35  ;;  %880 = vmatpush.msra.mxu2 %v644_v39  ;;  %v630_v35 = vld [vmem:[#allocation14 + $0x8] sm:$0xff]  ;;  %v633_v39 = vld [vmem:[#allocation14 + $0x20] sm:$0xff] }
 0x1ef   :  { %835 = vmatpush.msra.mxu1 %v647_v36  ;;  %792 = vmatpush.msra.mxu0 %v642_v29 }
 0x1f0   :  { %924 = vmatpush.msra.mxu3 %v645_v0  ;;  %881 = vmatpush.msra.mxu2 %v640_v1  ;;  %v634_v0 = vld [vmem:[#allocation14 + $0x28] sm:$0xff]  ;;  %v637_v1 = vld [vmem:[#allocation14 + $0x40] sm:$0xff] }
 0x1f1   :  { %882 = vmatmul.f32.vlgmr.msra.gmra.mxu2 %v629_v37  ;;  %836 = vmatpush.msra.mxu1 %v643_v28 }
 0x1f2   :  { %925 = vmatpush.msra.mxu3 %v641_v30  ;;  %793 = vmatpush.msra.mxu0 %v638_v34  ;;  %v768_v30 = vld [vmem:[#allocation13 + $0x4] sm:$0xf] }
 0x1f3   :  { %926 = vmatmul.f32.vlgmr.msra.gmra.mxu3 %v629_v37  ;;  %837 = vmatpush.msra.mxu1 %v639_v33  ;;  %v1887_v31 = vperm.slane %v768_v30, 1  ;;  %v1889_v36 = vperm.slane %v768_v30, 2  ;;  %v1891_v29 = vperm.slane %v768_v30, 3 }
 0x1f4   :  { %794 = vmatmul.f32.vlgmr.msra.gmra.mxu0 %v629_v37  ;;  %838 = vmatmul.f32.vlgmr.msra.gmra.mxu1 %v629_v37  ;;  %v1885_v37 = vperm.slane %v768_v30, 0 }
 0x1f9   :  { %885 = vmatmul.f32.gmra.mxu2 %v630_v35 }
 0x1fb   :  { %929 = vmatmul.f32.gmra.mxu3 %v630_v35 }
 0x1fc   :  { %797 = vmatmul.f32.gmra.mxu0 %v630_v35  ;;  %841 = vmatmul.f32.gmra.mxu1 %v630_v35 }
 0x201   :  { %888 = vmatmul.f32.gmra.mxu2 %v631_v32 }
 0x203   :  { %932 = vmatmul.f32.gmra.mxu3 %v631_v32 }
 0x204   :  { %800 = vmatmul.f32.gmra.mxu0 %v631_v32  ;;  %844 = vmatmul.f32.gmra.mxu1 %v631_v32 }
 0x209   :  { %891 = vmatmul.f32.gmra.mxu2 %v632_v38 }
 0x20b   :  { %935 = vmatmul.f32.gmra.mxu3 %v632_v38 }
 0x20c   :  { %803 = vmatmul.f32.gmra.mxu0 %v632_v38  ;;  %847 = vmatmul.f32.gmra.mxu1 %v632_v38 }
 0x211   :  { %894 = vmatmul.f32.gmra.mxu2 %v633_v39 }
 0x213   :  { %938 = vmatmul.f32.gmra.mxu3 %v633_v39 }
 0x214   :  { %806 = vmatmul.f32.gmra.mxu0 %v633_v39  ;;  %850 = vmatmul.f32.gmra.mxu1 %v633_v39 }
 0x219   :  { %897 = vmatmul.f32.gmra.mxu2 %v634_v0 }
 0x21b   :  { %941 = vmatmul.f32.gmra.mxu3 %v634_v0 }
 0x21c   :  { %809 = vmatmul.f32.gmra.mxu0 %v634_v0  ;;  %853 = vmatmul.f32.gmra.mxu1 %v634_v0 }
 0x221   :  { %900 = vmatmul.f32.gmra.mxu2 %v635_v2 }
 0x223   :  { %944 = vmatmul.f32.gmra.mxu3 %v635_v2 }
 0x224   :  { %812 = vmatmul.f32.gmra.mxu0 %v635_v2  ;;  %856 = vmatmul.f32.gmra.mxu1 %v635_v2 }
 0x229   :  { %903 = vmatmul.f32.gmra.mxu2 %v636_v27 }
 0x22b   :  { %947 = vmatmul.f32.gmra.mxu3 %v636_v27 }
 0x22c   :  { %815 = vmatmul.f32.gmra.mxu0 %v636_v27  ;;  %859 = vmatmul.f32.gmra.mxu1 %v636_v27 }
 0x231   :  { %906 = vmatmul.f32.gmra.mxu2 %v637_v1 }
 0x233   :  { %950 = vmatmul.f32.gmra.mxu3 %v637_v1 }
 0x234   :  { %818 = vmatmul.f32.gmra.mxu0 %v637_v1  ;;  %862 = vmatmul.f32.gmra.mxu1 %v637_v1 }
 0x271   :  { %v795_v28 = vpop.f32.mrf.mxu0  ;;  %v839_v34 = vpop.f32.mrf.mxu1 }
 0x272   :  { %v796_v33 = vadd.f32 %v795_v28, %v1885_v37  ;;  %v840_v35 = vadd.f32 %v839_v34, %v1887_v31 }
 0x274   :  { %v883_v32 = vpop.f32.mrf.mxu2  ;;  %954 = vst [vmem:[#allocation2] sm:$0xff] %v796_v33 }
 0x275   :  { %v884_v39 = vadd.f32 %v883_v32, %v1889_v36  ;;  %955 = vst [vmem:[#allocation2 + $0x8] sm:$0xff] %v840_v35 }
 0x276   :  { %v927_v38 = vpop.f32.mrf.mxu3 }
 0x277   :  { %v928_v0 = vadd.f32 %v927_v38, %v1891_v29  ;;  %956 = vst [vmem:[#allocation2 + $0x10] sm:$0xff] %v884_v39 }
 0x279   :  { %957 = vst [vmem:[#allocation2 + $0x18] sm:$0xff] %v928_v0  ;;  %v798_v2 = vpop.f32.mrf.mxu0  ;;  %v842_v27 = vpop.f32.mrf.mxu1 }
 0x27a   :  { %v799_v1 = vadd.f32 %v798_v2, %v1885_v37  ;;  %v843_v30 = vadd.f32 %v842_v27, %v1887_v31 }
 0x27c   :  { %v886_v42 = vpop.f32.mrf.mxu2  ;;  %958 = vst [vmem:[#allocation2 + $0x20] sm:$0xff] %v799_v1 }
 0x27d   :  { %v887_v34 = vadd.f32 %v886_v42, %v1889_v36  ;;  %959 = vst [vmem:[#allocation2 + $0x28] sm:$0xff] %v843_v30 }
 0x27e   :  { %v930_v28 = vpop.f32.mrf.mxu3 }
 0x27f   :  { %v931_v43 = vadd.f32 %v930_v28, %v1891_v29  ;;  %960 = vst [vmem:[#allocation2 + $0x30] sm:$0xff] %v887_v34 }
 0x281   :  { %961 = vst [vmem:[#allocation2 + $0x38] sm:$0xff] %v931_v43  ;;  %v801_v33 = vpop.f32.mrf.mxu0  ;;  %v845_v35 = vpop.f32.mrf.mxu1 }
 0x282   :  { %v802_v32 = vadd.f32 %v801_v33, %v1885_v37  ;;  %v846_v38 = vadd.f32 %v845_v35, %v1887_v31 }
 0x284   :  { %v889_v39 = vpop.f32.mrf.mxu2  ;;  %962 = vst [vmem:[#allocation2 + $0x40] sm:$0xff] %v802_v32 }
 0x285   :  { %v890_v2 = vadd.f32 %v889_v39, %v1889_v36  ;;  %963 = vst [vmem:[#allocation2 + $0x48] sm:$0xff] %v846_v38 }
 0x286   :  { %v933_v0 = vpop.f32.mrf.mxu3 }
 0x287   :  { %v934_v27 = vadd.f32 %v933_v0, %v1891_v29  ;;  %964 = vst [vmem:[#allocation2 + $0x50] sm:$0xff] %v890_v2 }
 0x289   :  { %965 = vst [vmem:[#allocation2 + $0x58] sm:$0xff] %v934_v27  ;;  %v804_v42 = vpop.f32.mrf.mxu0  ;;  %v848_v1 = vpop.f32.mrf.mxu1 }
 0x28a   :  { %v805_v43 = vadd.f32 %v804_v42, %v1885_v37  ;;  %v849_v30 = vadd.f32 %v848_v1, %v1887_v31 }
 0x28c   :  { %v892_v28 = vpop.f32.mrf.mxu2  ;;  %966 = vst [vmem:[#allocation2 + $0x60] sm:$0xff] %v805_v43 }
 0x28d   :  { %v893_v33 = vadd.f32 %v892_v28, %v1889_v36  ;;  %967 = vst [vmem:[#allocation2 + $0x68] sm:$0xff] %v849_v30 }
 0x28e   :  { %v936_v34 = vpop.f32.mrf.mxu3 }
 0x28f   :  { %v937_v35 = vadd.f32 %v936_v34, %v1891_v29  ;;  %968 = vst [vmem:[#allocation2 + $0x70] sm:$0xff] %v893_v33 }
 0x291   :  { %969 = vst [vmem:[#allocation2 + $0x78] sm:$0xff] %v937_v35  ;;  %v807_v32 = vpop.f32.mrf.mxu0  ;;  %v851_v38 = vpop.f32.mrf.mxu1 }
 0x292   :  { %v808_v39 = vadd.f32 %v807_v32, %v1885_v37  ;;  %v852_v0 = vadd.f32 %v851_v38, %v1887_v31 }
 0x294   :  { %v895_v2 = vpop.f32.mrf.mxu2  ;;  %970 = vst [vmem:[#allocation2 + $0x80] sm:$0xff] %v808_v39 }
 0x295   :  { %v896_v42 = vadd.f32 %v895_v2, %v1889_v36  ;;  %971 = vst [vmem:[#allocation2 + $0x88] sm:$0xff] %v852_v0 }
 0x296   :  { %v939_v27 = vpop.f32.mrf.mxu3 }
 0x297   :  { %v940_v1 = vadd.f32 %v939_v27, %v1891_v29  ;;  %972 = vst [vmem:[#allocation2 + $0x90] sm:$0xff] %v896_v42 }
 0x299   :  { %973 = vst [vmem:[#allocation2 + $0x98] sm:$0xff] %v940_v1  ;;  %v810_v43 = vpop.f32.mrf.mxu0  ;;  %v854_v30 = vpop.f32.mrf.mxu1 }
 0x29a   :  { %v811_v28 = vadd.f32 %v810_v43, %v1885_v37  ;;  %v855_v34 = vadd.f32 %v854_v30, %v1887_v31 }
 0x29c   :  { %v898_v33 = vpop.f32.mrf.mxu2  ;;  %974 = vst [vmem:[#allocation2 + $0xa0] sm:$0xff] %v811_v28 }
 0x29d   :  { %v899_v32 = vadd.f32 %v898_v33, %v1889_v36  ;;  %975 = vst [vmem:[#allocation2 + $0xa8] sm:$0xff] %v855_v34 }
 0x29e   :  { %v942_v35 = vpop.f32.mrf.mxu3 }
 0x29f   :  { %v943_v38 = vadd.f32 %v942_v35, %v1891_v29  ;;  %976 = vst [vmem:[#allocation2 + $0xb0] sm:$0xff] %v899_v32 }
 0x2a1   :  { %977 = vst [vmem:[#allocation2 + $0xb8] sm:$0xff] %v943_v38  ;;  %v813_v39 = vpop.f32.mrf.mxu0  ;;  %v857_v0 = vpop.f32.mrf.mxu1 }
 0x2a2   :  { %v814_v2 = vadd.f32 %v813_v39, %v1885_v37  ;;  %v858_v27 = vadd.f32 %v857_v0, %v1887_v31 }
 0x2a4   :  { %v901_v42 = vpop.f32.mrf.mxu2  ;;  %978 = vst [vmem:[#allocation2 + $0xc0] sm:$0xff] %v814_v2 }
 0x2a5   :  { %v902_v43 = vadd.f32 %v901_v42, %v1889_v36  ;;  %979 = vst [vmem:[#allocation2 + $0xc8] sm:$0xff] %v858_v27 }
 0x2a6   :  { %v945_v1 = vpop.f32.mrf.mxu3 }
 0x2a7   :  { %v946_v30 = vadd.f32 %v945_v1, %v1891_v29  ;;  %980 = vst [vmem:[#allocation2 + $0xd0] sm:$0xff] %v902_v43 }
 0x2a9   :  { %981 = vst [vmem:[#allocation2 + $0xd8] sm:$0xff] %v946_v30  ;;  %v816_v28 = vpop.f32.mrf.mxu0  ;;  %v860_v34 = vpop.f32.mrf.mxu1 }
 0x2aa   :  { %v817_v33 = vadd.f32 %v816_v28, %v1885_v37  ;;  %v861_v35 = vadd.f32 %v860_v34, %v1887_v31 }
 0x2ac   :  { %v904_v32 = vpop.f32.mrf.mxu2  ;;  %982 = vst [vmem:[#allocation2 + $0xe0] sm:$0xff] %v817_v33 }
 0x2ad   :  { %v905_v39 = vadd.f32 %v904_v32, %v1889_v36  ;;  %983 = vst [vmem:[#allocation2 + $0xe8] sm:$0xff] %v861_v35 }
 0x2ae   :  { %v948_v38 = vpop.f32.mrf.mxu3 }
 0x2af   :  { %v949_v0 = vadd.f32 %v948_v38, %v1891_v29  ;;  %984 = vst [vmem:[#allocation2 + $0xf0] sm:$0xff] %v905_v39 }
 0x2b1   :  { %985 = vst [vmem:[#allocation2 + $0xf8] sm:$0xff] %v949_v0  ;;  %v819_v2 = vpop.f32.mrf.mxu0  ;;  %v863_v27 = vpop.f32.mrf.mxu1 }
 0x2b2   :  { %v820_v42 = vadd.f32 %v819_v2, %v1885_v37  ;;  %v864_v1 = vadd.f32 %v863_v27, %v1887_v31 }
 0x2b4   :  { %v907_v43 = vpop.f32.mrf.mxu2  ;;  %986 = vst [vmem:[#allocation2 + $0x100] sm:$0xff] %v820_v42 }
 0x2b5   :  { %v908_v28 = vadd.f32 %v907_v43, %v1889_v36  ;;  %987 = vst [vmem:[#allocation2 + $0x108] sm:$0xff] %v864_v1 }
 0x2b6   :  { %v951_v30 = vpop.f32.mrf.mxu3 }
 0x2b7   :  { %v952_v34 = vadd.f32 %v951_v30, %v1891_v29  ;;  %988 = vst [vmem:[#allocation2 + $0x110] sm:$0xff] %v908_v28 }
 0x2b9   :  { %989 = vst [vmem:[#allocation2 + $0x118] sm:$0xff] %v952_v34 }
 0x2ba LB: > { %1009 = vmatpush.msra.mxu0 %v1877_v18  ;;  %1029 = vmatpush.msra.mxu1 %v1879_v26  ;;  %v2102_v7 = vld [vmem:[#allocation45_spill] sm:$0xff]  ;;  %v2103_v5 = vld [vmem:[#allocation43_spill] sm:$0xff]  ;;  %v2104_v4 = vld [vmem:[#allocation44_spill] sm:$0xff]  ;;  %s1206_s26 = sshll.u32 %s1441_s25, 3  ;;  %s997_s25 = sadd.s32 1, %s1441_s25   ;;  %s1441_s25 = sphi %s1929_s25, %s997_s25  }
 0x2bb   : > { %1069 = vmatpush.msra.mxu3 %v2102_v7  ;;  %1049 = vmatpush.msra.mxu2 %v1881_v15  ;;  %v2105_v6 = vld [vmem:[#allocation41_spill] sm:$0xff]  ;;  %v2106_v11 = vld [vmem:[#allocation42_spill] sm:$0xff]  ;;  %v2107_v8 = vld [vmem:[#allocation39_spill] sm:$0xff]  ;;  %s999_s27 = sshra.s32 %s1206_s26, 3  ;;  %s1159_s30 = scalar_lea.vmem [#allocation14], %s1206_s26 }
 0x2bc   : > { %1010 = vmatpush.msra.mxu0 %v1869_v22  ;;  %1030 = vmatpush.msra.mxu1 %v1871_v23  ;;  %v2108_v3 = vld [vmem:[#allocation40_spill] sm:$0xff]  ;;  %v2109_v10 = vld [vmem:[#allocation37_spill] sm:$0xff]  ;;  %v2110_v9 = vld [vmem:[#allocation38_spill] sm:$0xff]  ;;  %s1213_s28 = sshll.u32 %s999_s27, 5  ;;  %p994_p1 = scmp.ge.s32.totalorder %s997_s25, 9  }
 0x2bd   : > { %1070 = vmatpush.msra.mxu3 %v1875_v25  ;;  %1050 = vmatpush.msra.mxu2 %v1873_v24  ;;  %v2111_v37 = vld [vmem:[#allocation36_spill] sm:$0xff]  ;;  %v2112_v31 = vld [vmem:[#allocation35_spill] sm:$0xff]  ;;  %v2115_v33 = vld [vmem:[#allocation34_spill] sm:$0xff]  ;;  %s1003_s29 = scalar_lea.vmem [#allocation2], %s1213_s28  ;;  %s1167_s1 = sshll.u32 (%p994_p1), %s2017_s5, 4  ;;  %s1168_s1 = int_to_ptr.hbm [resolvable:$true] %s1167_s1 }
 0x2be   : > { %1011 = vmatpush.msra.mxu0 %v2103_v5  ;;  %1031 = vmatpush.msra.mxu1 %v2104_v4  ;;  %v2113_v36 = vld [vmem:[#allocation31_spill] sm:$0xff]  ;;  %v2114_v29 = vld [vmem:[#allocation32_spill] sm:$0xff]  ;;  %v2116_v35 = vld [vmem:[#allocation33_spill] sm:$0xff]  ;;  %s1455_s8 = smov (%p994_p1), [#allocation14]  }
 0x2bf   : > { %1071 = vmatpush.msra.mxu3 %v1867_v17  ;;  %1051 = vmatpush.msra.mxu2 %v1865_v21  ;;  %v2117_v32 = vld [vmem:[#allocation27_spill] sm:$0xff]  ;;  %v2118_v38 = vld [vmem:[#allocation28_spill] sm:$0xff]  ;;  %v2119_v39 = vld [vmem:[#allocation30_spill] sm:$0xff]  ;;  %s1165_s9 = sshll.u32 (%p994_p1), %s1455_s8, 4  ;;  %s1166_s9 = int_to_ptr.vmem [resolvable:$true] %s1165_s9 }
 0x2c0   : > { %1012 = vmatpush.msra.mxu0 %v1853_v14  ;;  %1032 = vmatpush.msra.mxu1 %v2105_v6  ;;  %v2120_v0 = vld [vmem:[#allocation29_spill] sm:$0xff]  ;;  %v2121_v2 = vld [vmem:[#allocation23_spill] sm:$0xff]  ;;  %v2122_v27 = vld [vmem:[#allocation24_spill] sm:$0xff] }
 0x2c1   : > { %1072 = vmatpush.msra.mxu3 %v1859_v20  ;;  %1052 = vmatpush.msra.mxu2 %v2106_v11  ;;  %v1008_v42 = vld [vmem:[#allocation3] sm:$0xff]  ;;  %v2124_v43 = vld [vmem:[#allocation25_spill] sm:$0xff]  ;;  %v2125_v30 = vld [vmem:[#allocation19_spill] sm:$0xff] }
 0x2c2   : > { %1013 = vmatpush.msra.mxu0 %v2107_v8  ;;  %1033 = vmatpush.msra.mxu1 %v1847_v19  ;;  %v2123_v1 = vld [vmem:[#allocation26_spill] sm:$0xff]  ;;  %v2126_v28 = vld [vmem:[#allocation20_spill] sm:$0xff] }
 0x2c3   : > { %1073 = vmatpush.msra.mxu3 %v1851_v13  ;;  %1053 = vmatpush.msra.mxu2 %v2108_v3  ;;  %v2127_v34 = vld [vmem:[#allocation22_spill] sm:$0xff] }
 0x2c4   : > { %1014 = vmatpush.msra.mxu0 %v2109_v10  ;;  %1034 = vmatpush.msra.mxu1 %v1839_v12 }
 0x2c5   : > { %1074 = vmatpush.msra.mxu3 %v2110_v9  ;;  %1054 = vmatpush.msra.mxu2 %v1841_v16 }
 0x2c6   : > { %1015 = vmatpush.msra.mxu0 %v1829_v60  ;;  %1035 = vmatpush.msra.mxu1 %v1831_v61 }
 0x2c7   : > { %1075 = vmatpush.msra.mxu3 %v1835_v63  ;;  %1055 = vmatpush.msra.mxu2 %v1833_v62 }
 0x2c8   : > { %1016 = vmatpush.msra.mxu0 %v1821_v56  ;;  %1036 = vmatpush.msra.mxu1 %v1823_v57 }
 0x2c9   : > { %1076 = vmatpush.msra.mxu3 %v1827_v59  ;;  %1056 = vmatpush.msra.mxu2 %v1825_v58 }
 0x2ca   : > { %1017 = vmatpush.msra.mxu0 %v1813_v52  ;;  %1037 = vmatpush.msra.mxu1 %v1815_v53 }
 0x2cb   : > { %1077 = vmatpush.msra.mxu3 %v1819_v55  ;;  %1057 = vmatpush.msra.mxu2 %v1817_v54 }
 0x2cc   : > { %1018 = vmatpush.msra.mxu0 %v1805_v48  ;;  %1038 = vmatpush.msra.mxu1 %v1807_v49 }
 0x2cd   : > { %1078 = vmatpush.msra.mxu3 %v1811_v51  ;;  %1058 = vmatpush.msra.mxu2 %v1809_v50 }
 0x2ce   : > { %1019 = vmatpush.msra.mxu0 %v1797_v44  ;;  %1039 = vmatpush.msra.mxu1 %v1799_v45 }
 0x2cf   : > { %1079 = vmatpush.msra.mxu3 %v1803_v47  ;;  %1059 = vmatpush.msra.mxu2 %v1801_v46 }
 0x2d0   : > { %1020 = vmatpush.msra.mxu0 %v1789_v40  ;;  %1040 = vmatpush.msra.mxu1 %v1791_v41 }
 0x2d1   : > { %1080 = vmatpush.msra.mxu3 %v2111_v37  ;;  %1060 = vmatpush.msra.mxu2 %v2112_v31  ;;  %v2128_v37 = vld [vmem:[#allocation21_spill] sm:$0xff]  ;;  %v1004_v31 = vld [vmem:[%s1003_s29] sm:$0xff] }
 0x2d2   : > { %1021 = vmatpush.msra.mxu0 %v2113_v36  ;;  %1041 = vmatpush.msra.mxu1 %v2114_v29  ;;  %v1005_v36 = vld [vmem:[%s1003_s29 + $0x8] sm:$0xff] }
 0x2d3   : > { %1081 = vmatpush.msra.mxu3 %v2115_v33  ;;  %1061 = vmatpush.msra.mxu2 %v2116_v35 }
 0x2d4   : > { %1022 = vmatpush.msra.mxu0 %v2117_v32  ;;  %1042 = vmatpush.msra.mxu1 %v2118_v38 }
 0x2d5   : > { %1082 = vmatpush.msra.mxu3 %v2119_v39  ;;  %1062 = vmatpush.msra.mxu2 %v2120_v0  ;;  %v1007_v0 = vld [vmem:[%s1003_s29 + $0x18] sm:$0xff] }
 0x2d6   : > { %1023 = vmatpush.msra.mxu0 %v2121_v2  ;;  %1043 = vmatpush.msra.mxu1 %v2122_v27 }
 0x2d7   : > { %1083 = vmatpush.msra.mxu3 %v2123_v1  ;;  %1063 = vmatpush.msra.mxu2 %v2124_v43 }
 0x2d8   : > { %1024 = vmatpush.msra.mxu0 %v2125_v30  ;;  %1044 = vmatpush.msra.mxu1 %v2126_v28 }
 0x2d9   : > { %1084 = vmatpush.msra.mxu3 %v2127_v34  ;;  %1025 = vmatmul.f32.vlgmr.msra.gmra.mxu0 %v1008_v42  ;;  %v1006_v34 = vld [vmem:[%s1003_s29 + $0x10] sm:$0xff] }
 0x2da   : > { %1045 = vmatmul.f32.vlgmr.msra.gmra.mxu1 %v1008_v42  ;;  %1085 = vmatmul.f32.vlgmr.msra.gmra.mxu3 %v1008_v42 }
 0x2db   : > { %1064 = vmatpush.msra.mxu2 %v2128_v37 }
 0x2dc   : > { %1065 = vmatmul.f32.vlgmr.msra.gmra.mxu2 %v1008_v42 }
 0x356   : > { %v1026_v29 = vpop.f32.mrf.mxu0 }
 0x357   : > { %v1089_v33 = vadd.f32 %v1026_v29, %v1004_v31  ;;  %v1046_v35 = vpop.f32.mrf.mxu1 }
 0x358   : > { %v1090_v32 = vadd.f32 %v1046_v35, %v1005_v36 }
 0x359   : > { %v1209_v38 = vmul.f32 -1.442695, %v1089_v33 }
 0x35a   : > { %v1210_v39 = vmul.f32 -1.442695, %v1090_v32 }
 0x35b   : > { %1259 = vpow2.f32 %v1209_v38 }
 0x35c   : > { %1261 = vpow2.f32 %v1210_v39 }
 0x35d   : > { %v1086_v2 = vpop.f32.mrf.mxu3 }
 0x35e   : > { %v1092_v27 = vadd.f32 %v1086_v2, %v1007_v0 }
 0x35f   : > { %v1066_v37 = vpop.f32.mrf.mxu2 }
 0x360   : > { %v1211_v1 = vmul.f32 -1.442695, %v1092_v27  ;;  %v1091_v29 = vadd.f32 %v1066_v37, %v1006_v34 }
 0x361   : > { %v1260_v42 = vpop.eup %1259 }
 0x362   : > { %v1262_v43 = vpop.eup %1261  ;;  %v1096_v30 = vadd.f32 1.0, %v1260_v42  ;;  %1263 = vpow2.f32 %v1211_v1 }
 0x363   : > { %v1115_v28 = vadd.f32 1.0, %v1262_v43 }
 0x364   : > { %1265 = vrcp.f32 %v1096_v30  ;;  %v1108_v2 = vand.u32 2147483648, %v1096_v30  ;;  %v1106_v1 = vand.u32 2147483647, %v1096_v30  ;;  %vm1102_vm14 = vweird.f32 %v1096_v30 }
 0x365   : > { %1267 = vrcp.f32 %v1115_v28  ;;  %v1127_v27 = vand.u32 2147483648, %v1115_v28  ;;  %v1125_v3 = vand.u32 2147483647, %v1115_v28  ;;  %vm1121_vm15 = vweird.f32 %v1115_v28 }
 0x366   : > { %vm1107_vm2 = vcmp.eq.f32.partialorder %v1106_v1, 8.507059e+37 }
 0x367   : > { %vm1126_vm3 = vcmp.eq.f32.partialorder %v1125_v3, 8.507059e+37 }
 0x368   : > { %v1264_v31 = vpop.eup %1263 }
 0x369   : > { %v1135_v36 = vadd.f32 1.0, %v1264_v31  ;;  %v1109_v31 = vor.u32 1.1754944e-38, %v1108_v2 }
 0x36a   : > { %v1266_v33 = vpop.eup %1265 }
 0x36b   : > { %v1268_v35 = vpop.eup %1267  ;;  %v1098_v32 = vmul.f32 %v1266_v33, %v1096_v30  ;;  %1269 = vrcp.f32 %v1135_v36  ;;  %vm1103_vm12 = vweird.f32 %v1266_v33  ;;  %v1147_v11 = vand.u32 2147483648, %v1135_v36 }
 0x36c   : > { %v1117_v38 = vmul.f32 %v1268_v35, %v1115_v28  ;;  %1271 = vtanh.f32 %v1091_v29  ;;  %vm1122_vm13 = vweird.f32 %v1268_v35  ;;  %vm1104_vm0 = vmor %vm1102_vm14, %vm1103_vm12  ;;  %v1128_v29 = vor.u32 1.1754944e-38, %v1127_v27 }
 0x36d   : > { %v1099_v39 = vsub.f32 1.0, %v1098_v32  ;;  %vm1123_vm1 = vmor %vm1121_vm15, %vm1122_vm13  ;;  %vm1141_vm5 = vweird.f32 %v1135_v36  ;;  %v1145_v2 = vand.u32 2147483647, %v1135_v36 }
 0x36e   : > { %v1118_v0 = vsub.f32 1.0, %v1117_v38  ;;  %v1151_v38 = vld [vmem:[#allocation4] sm:$0xff] }
 0x36f   : > { %v1100_v42 = vmul.f32 %v1266_v33, %v1099_v39  ;;  %vm1146_vm7 = vcmp.eq.f32.partialorder %v1145_v2, 8.507059e+37 }
 0x370   : > { %v1119_v43 = vmul.f32 %v1268_v35, %v1118_v0 }
 0x371   : > { %v1270_v4 = vpop.eup %1269  ;;  %v1101_v5 = vadd.f32 %v1266_v33, %v1100_v42 }
 0x372   : > { %v1272_v34 = vpop.eup %1271  ;;  %v1137_v37 = vmul.f32 %v1270_v4, %v1135_v36  ;;  %v1120_v6 = vadd.f32 %v1268_v35, %v1119_v43  ;;  %vm1142_vm4 = vweird.f32 %v1270_v4 }
 0x373   : > { %v1105_v32 = vsel %vm1104_vm0, %v1266_v33, %v1101_v5  ;;  %vm1143_vm6 = vmor %vm1141_vm5, %vm1142_vm4  ;;  %v1148_v33 = vor.u32 1.1754944e-38, %v1147_v11 }
 0x374   : > { %v1138_v39 = vsub.f32 1.0, %v1137_v37  ;;  %v1110_v7 = vsel %vm1107_vm2, %v1109_v31, %v1105_v32  ;;  %v1124_v8 = vsel %vm1123_vm1, %v1268_v35, %v1120_v6 }
 0x375   : > { %v1129_v0 = vsel %vm1126_vm3, %v1128_v29, %v1124_v8  ;;  %v1153_v9 = vmul.f32 %v1272_v34, %v1110_v7 }
 0x376   : > { %v1139_v10 = vmul.f32 %v1270_v4, %v1138_v39  ;;  %v1152_v42 = vmul.f32 %v1151_v38, %v1129_v0 }
 0x378   : > { %v1154_v30 = vadd.f32 %v1153_v9, %v1152_v42  ;;  %v1140_v28 = vadd.f32 %v1270_v4, %v1139_v10 }
 0x37a   : > { %1273 = vtanh.f32 %v1154_v30  ;;  %1157 = vst [vmem:[#allocation4] sm:$0xff] %v1154_v30  ;;  %v1144_v5 = vsel %vm1143_vm6, %v1270_v4, %v1140_v28 }
 0x37b   : > { %v1149_v6 = vsel %vm1146_vm7, %v1148_v33, %v1144_v5 }
 0x380   : > { %v1274_v27 = vpop.eup %1273  ;;  %996 = sbr.rel (!%p994_p1) target bundleno = 698 (0x2ba), region = 91 }
 0x381   : > { %v1156_v3 = vmul.f32 %v1274_v27, %v1149_v6 }
 0x383   : > { %1158 = vst [vmem:[#allocation3] sm:$0xff] %v1156_v3 }
 0x384   : > { %1160 = vst [vmem:[%s1159_s30] sm:$0xff] %v1156_v3 }
 0x385   :  { %1173 = dma.vmem_to_hbm [thread:$0]  %s1166_s9, 1152, %s1168_s1, [#allocation7], %s1448_s11, %s1448_s11, %s1449_s12  }
 0x386   :  { %1433 = dma.done.wait [#allocation7], 1152  }
 0x387   :  { %1434 = vsyncadd [#allocation7], 4294966144 }
 0x388   :  { %1178 = vsyncpa [#allocation6], 1 }
 0x389   :  { %1179 = vsyncpa [#allocation9], 1 }
 0x38a   :  { %1180 = vsyncpa [#allocation12], 1 }
 0x38b   :  { %1181 = vsyncpa [#allocation7], 1 }

</bundles_post_ra>
